<compile_context>
chip_gen: v5e
topology: v5e:2x2
jax: 0.10.0
libtpu: 0.0.40
codegen_flags: <defaults>
</compile_context>

<pallas_src>
import jax
import jax.numpy as jnp
from jax.experimental import pallas as pl
from jax.experimental.pallas import tpu as pltpu

BN_EPS = 1e-5
HIDDEN = 512
OUT_PAD = 128            # lane-dense output width (out_f padded up to 128)


def _round_up(x, m):
    return ((x + m - 1) // m) * m


def head_kernel(x_ref, w1_ref, b1_ref, w2_ref, b2_ref, o_ref, acc_ref):
    """Grid axis 0 = K-reduction over in_f (streamed W1' tiles)."""
    k = pl.program_id(0)

    @pl.when(k == 0)
    def _():
        acc_ref[...] = jnp.zeros_like(acc_ref)

    # Streamed bf16 x-tile @ bf16 W1'-tile, f32 accumulation on the MXU.
    acc_ref[...] += jnp.dot(x_ref[...], w1_ref[...],
                            preferred_element_type=jnp.float32)

    @pl.when(k == pl.num_programs(0) - 1)
    def _():
        # Epilogue: bias + ReLU, small second matmul (VMEM-resident W2'),
        # bias + sigmoid, lane-dense (B, 128) store.
        h = jnp.maximum(acc_ref[...] + b1_ref[...], 0.0)
        z = jnp.dot(h, w2_ref[...], preferred_element_type=jnp.float32)
        o_ref[...] = jax.nn.sigmoid(z + b2_ref[...])


def head_forward(x_nchw, params):
    """x_nchw: (B, C, H, W) float32. Returns sigmoid outputs (B, out_f)."""
    (g1, be1, rm1, rv1, w1t, b1, g2, be2, rm2, rv2, w2t, b2) = params
    B = x_nchw.shape[0]
    in_f = w1t.shape[0]
    out_f = w2t.shape[1]

    x2d = x_nchw.reshape(B, -1).astype(jnp.float32)          # nn.Flatten (row-major)

    # ---- fold eval-mode BatchNorms into the adjacent Linears (in f32) ----
    s1 = g1 * jax.lax.rsqrt(rv1 + BN_EPS)                    # (1, in_f)
    w1f = w1t * s1.reshape(in_f, 1)                          # (in_f, 512)
    b1f = b1 + (be1 - rm1 * s1) @ w1t                        # (1, 512)

    s2 = g2 * jax.lax.rsqrt(rv2 + BN_EPS)                    # (1, 512)
    w2f = w2t * s2.reshape(HIDDEN, 1)                        # (512, out_f)
    b2f = b2 + (be2 - rm2 * s2) @ w2t                        # (1, out_f)

    # ---- pad K to a TK multiple (zero-pad contributes nothing) and out_f to 128 ----
    tk = min(2048, _round_up(in_f, 256))
    k_pad = _round_up(in_f, tk)
    x_p = jnp.zeros((B, k_pad), jnp.float32).at[:, :in_f].set(x2d)
    w1_p = jnp.zeros((k_pad, HIDDEN), jnp.float32).at[:in_f, :].set(w1f)
    w2_p = jnp.zeros((HIDDEN, OUT_PAD), jnp.float32).at[:, :out_f].set(w2f)
    b2_p = jnp.zeros((1, OUT_PAD), jnp.float32).at[:, :out_f].set(b2f)

    # bf16 streaming for the large operands; accumulation stays f32 in-kernel.
    x_p = x_p.astype(jnp.bfloat16)
    w1_p = w1_p.astype(jnp.bfloat16)

    n_k = k_pad // tk
    out = pl.pallas_call(
        head_kernel,
        out_shape=jax.ShapeDtypeStruct((B, OUT_PAD), jnp.float32),
        grid_spec=pltpu.PrefetchScalarGridSpec(
            num_scalar_prefetch=0,
            grid=(n_k,),
            in_specs=[
                pl.BlockSpec((B, tk), lambda k: (0, k)),            # x tile (streamed)
                pl.BlockSpec((tk, HIDDEN), lambda k: (k, 0)),       # W1' tile (streamed)
                pl.BlockSpec((1, HIDDEN), lambda k: (0, 0)),        # b1' (resident)
                pl.BlockSpec((HIDDEN, OUT_PAD), lambda k: (0, 0)),  # W2' (resident)
                pl.BlockSpec((1, OUT_PAD), lambda k: (0, 0)),       # b2' (resident)
            ],
            out_specs=pl.BlockSpec((B, OUT_PAD), lambda k: (0, 0)),
            scratch_shapes=[pltpu.VMEM((B, HIDDEN), jnp.float32)],
        ),
        compiler_params=pltpu.CompilerParams(
            dimension_semantics=("arbitrary",),                     # K is a reduction axis
            vmem_limit_bytes=32 * 1024 * 1024,
        ),
    )(x_p, w1_p, b1f, w2_p, b2_p)

    return out[:, :out_f]


def init_params(key, in_f, out_f, hidden=HIDDEN):
    ks = jax.random.split(key, 10)
    # BatchNorm1d(in_f)
    g1 = 1.0 + 0.01 * jax.random.normal(ks[0], (1, in_f), jnp.float32)
    be1 = 0.01 * jax.random.normal(ks[1], (1, in_f), jnp.float32)
    rm1 = 0.05 * jax.random.normal(ks[2], (1, in_f), jnp.float32)
    rv1 = jnp.ones((1, in_f), jnp.float32)

    # Linear(in_f, 512): stored transposed (in_f, 512)
    w1t = jax.random.normal(ks[3], (in_f, hidden), jnp.float32) * (1.0 / jnp.sqrt(in_f))
    b1 = 0.01 * jax.random.normal(ks[4], (1, hidden), jnp.float32)

    # BatchNorm1d(512)
    g2 = 1.0 + 0.01 * jax.random.normal(ks[5], (1, hidden), jnp.float32)
    be2 = 0.01 * jax.random.normal(ks[6], (1, hidden), jnp.float32)
    rm2 = 0.05 * jax.random.normal(ks[7], (1, hidden), jnp.float32)
    rv2 = jnp.ones((1, hidden), jnp.float32)

    # Linear(512, out_f): stored transposed (512, out_f)
    w2t = jax.random.normal(ks[8], (hidden, out_f), jnp.float32) * (1.0 / jnp.sqrt(hidden))
    b2 = 0.01 * jax.random.normal(ks[9], (1, out_f), jnp.float32)

    return (g1, be1, rm1, rv1, w1t, b1, g2, be2, rm2, rv2, w2t, b2)


def reference_forward(x_nchw, params):
    """Pure-JAX f32 reference (unfolded BN, eval-mode) for correctness check."""
    (g1, be1, rm1, rv1, w1t, b1, g2, be2, rm2, rv2, w2t, b2) = params
    x = x_nchw.reshape(x_nchw.shape[0], -1)
    x = (x - rm1) / jnp.sqrt(rv1 + BN_EPS) * g1 + be1
    h = jnp.maximum(x @ w1t + b1, 0.0)
    h = (h - rm2) / jnp.sqrt(rv2 + BN_EPS) * g2 + be2
    return jax.nn.sigmoid(h @ w2t + b2)


if __name__ == "__main__":
    key = jax.random.PRNGKey(0)
    k_x, k_p = jax.random.split(key)

    B, C, H, W = 2, 4, 16, 16          # in_f = C*H*W = 1024
    out_f = 10

    x = jax.random.normal(k_x, (B, C, H, W), jnp.float32)
    params = init_params(k_p, in_f=C * H * W, out_f=out_f)

    out = head_forward(x, params)
    out = jax.block_until_ready(out)

    ref = reference_forward(x, params)
    assert out.shape == (B, out_f)
    # bf16 weight streaming (f32 accumulation) -> small deviation vs pure-f32 ref.
    assert jnp.allclose(out, ref, atol=1e-2, rtol=1e-2), "mismatch vs reference"

    print("KERNEL_OK")
</pallas_src>

<mosaic_0001>
module attributes {stable_mosaic.version = 11 : i64} {
  func.func @head_kernel(%arg0: i32, %arg1: memref<2x1024xbf16, #tpu.memory_space<vmem>>, %arg2: memref<1024x512xbf16, #tpu.memory_space<vmem>>, %arg3: memref<1x512xf32, #tpu.memory_space<vmem>>, %arg4: memref<512x128xf32, #tpu.memory_space<vmem>>, %arg5: memref<1x128xf32, #tpu.memory_space<vmem>>, %arg6: memref<2x128xf32, #tpu.memory_space<vmem>>, %arg7: memref<2x512xf32, #tpu.memory_space<vmem>>) attributes {dimension_semantics = [#tpu.dimension_semantics<arbitrary>], iteration_bounds = array<i64: 1>, scalar_prefetch = 0 : i64, scratch_operands = 1 : i64, tpu.core_type = #tpu.core_type<tc>, window_params = [{transform_indices = @transform_0, window_bounds = array<i64: 2, 1024>}, {transform_indices = @transform_1, window_bounds = array<i64: 1024, 512>}, {pipeline_mode = #tpu.pipeline_mode<synchronous>, transform_indices = @transform_2, window_bounds = array<i64: 1, 512>}, {pipeline_mode = #tpu.pipeline_mode<synchronous>, transform_indices = @transform_3, window_bounds = array<i64: 512, 128>}, {pipeline_mode = #tpu.pipeline_mode<synchronous>, transform_indices = @transform_4, window_bounds = array<i64: 1, 128>}, {pipeline_mode = #tpu.pipeline_mode<synchronous>, transform_indices = @transform_5, window_bounds = array<i64: 2, 128>}]} {
    %c0_i32 = arith.constant 0 : i32
    %0 = arith.cmpi eq, %arg0, %c0_i32 : i32
    %1 = arith.extui %0 : i1 to i32
    %c0_i32_0 = arith.constant 0 : i32
    %2 = arith.cmpi ne, %1, %c0_i32_0 : i32
    scf.if %2 {
      %cst_10 = arith.constant 0.000000e+00 : f32
      %12 = vector.broadcast %cst_10 : f32 to vector<2x512xf32>
      %c0_11 = arith.constant 0 : index
      %c0_12 = arith.constant 0 : index
      %13 = vector.load %arg7[%c0_11, %c0_12] : memref<2x512xf32, #tpu.memory_space<vmem>>, vector<2x512xf32>
      tpu.vector_store %arg7[%c0_11, %c0_12], %12 {strides = array<i32>} : memref<2x512xf32, #tpu.memory_space<vmem>>, vector<2x512xf32>,
    } else {
    }
    %c0 = arith.constant 0 : index
    %c0_1 = arith.constant 0 : index
    %3 = vector.load %arg7[%c0, %c0_1] : memref<2x512xf32, #tpu.memory_space<vmem>>, vector<2x512xf32>
    %c0_2 = arith.constant 0 : index
    %c0_3 = arith.constant 0 : index
    %4 = vector.load %arg1[%c0_2, %c0_3] : memref<2x1024xbf16, #tpu.memory_space<vmem>>, vector<2x1024xbf16>
    %c0_4 = arith.constant 0 : index
    %c0_5 = arith.constant 0 : index
    %5 = vector.load %arg2[%c0_4, %c0_5] : memref<1024x512xbf16, #tpu.memory_space<vmem>>, vector<1024x512xbf16>
    %cst = arith.constant dense<0.000000e+00> : vector<2x512xf32>
    %6 = tpu.matmul %4, %5, %cst {dimension_numbers = #tpu.dot_dimension_numbers<[1], [0], [0], [1], [0, 0, 1, 1], [], []>} : vector<2x1024xbf16>, vector<1024x512xbf16>, vector<2x512xf32> -> vector<2x512xf32>
    %7 = arith.addf %3, %6 : vector<2x512xf32>
    %c0_6 = arith.constant 0 : index
    %c0_7 = arith.constant 0 : index
    %8 = vector.load %arg7[%c0_6, %c0_7] : memref<2x512xf32, #tpu.memory_space<vmem>>, vector<2x512xf32>
    tpu.vector_store %arg7[%c0_6, %c0_7], %7 {strides = array<i32>} : memref<2x512xf32, #tpu.memory_space<vmem>>, vector<2x512xf32>,
    %c0_i32_8 = arith.constant 0 : i32
    %9 = arith.cmpi eq, %arg0, %c0_i32_8 : i32
    %10 = arith.extui %9 : i1 to i32
    %c0_i32_9 = arith.constant 0 : i32
    %11 = arith.cmpi ne, %10, %c0_i32_9 : i32
    scf.if %11 {
      %c0_10 = arith.constant 0 : index
      %c0_11 = arith.constant 0 : index
      %12 = vector.load %arg7[%c0_10, %c0_11] : memref<2x512xf32, #tpu.memory_space<vmem>>, vector<2x512xf32>
      %c0_12 = arith.constant 0 : index
      %c0_13 = arith.constant 0 : index
      %13 = vector.load %arg3[%c0_12, %c0_13] : memref<1x512xf32, #tpu.memory_space<vmem>>, vector<1x512xf32>
      %14 = vector.broadcast %13 : vector<1x512xf32> to vector<2x512xf32>
      %15 = arith.addf %12, %14 : vector<2x512xf32>
      %cst_14 = arith.constant 0.000000e+00 : f32
      %16 = vector.broadcast %cst_14 : f32 to vector<2x512xf32>
      %17 = arith.maximumf %15, %16 : vector<2x512xf32>
      %c0_15 = arith.constant 0 : index
      %c0_16 = arith.constant 0 : index
      %18 = vector.load %arg4[%c0_15, %c0_16] : memref<512x128xf32, #tpu.memory_space<vmem>>, vector<512x128xf32>
      %cst_17 = arith.constant dense<0.000000e+00> : vector<2x128xf32>
      %19 = tpu.matmul %17, %18, %cst_17 {dimension_numbers = #tpu.dot_dimension_numbers<[1], [0], [0], [1], [0, 0, 1, 1], [], []>} : vector<2x512xf32>, vector<512x128xf32>, vector<2x128xf32> -> vector<2x128xf32>
      %c0_18 = arith.constant 0 : index
      %c0_19 = arith.constant 0 : index
      %20 = vector.load %arg5[%c0_18, %c0_19] : memref<1x128xf32, #tpu.memory_space<vmem>>, vector<1x128xf32>
      %21 = vector.broadcast %20 : vector<1x128xf32> to vector<2x128xf32>
      %22 = arith.addf %19, %21 : vector<2x128xf32>
      %23 = arith.negf %22 : vector<2x128xf32>
      %24 = math.exp %23 : vector<2x128xf32>
      %cst_20 = arith.constant 1.000000e+00 : f32
      %25 = vector.broadcast %cst_20 : f32 to vector<2x128xf32>
      %26 = arith.addf %25, %24 : vector<2x128xf32>
      %27 = arith.divf %25, %26 : vector<2x128xf32>
      %c0_21 = arith.constant 0 : index
      %c0_22 = arith.constant 0 : index
      %28 = vector.load %arg6[%c0_21, %c0_22] : memref<2x128xf32, #tpu.memory_space<vmem>>, vector<2x128xf32>
      tpu.vector_store %arg6[%c0_21, %c0_22], %27 {strides = array<i32>} : memref<2x128xf32, #tpu.memory_space<vmem>>, vector<2x128xf32>,
    } else {
    }
    return
  }
  func.func @transform_0(%arg0: i32) -> (i32, i32) {
    %c0_i32 = arith.constant 0 : i32
    %c0_i32_0 = arith.constant 0 : i32
    return %c0_i32, %arg0 : i32, i32
  }
  func.func @transform_1(%arg0: i32) -> (i32, i32) {
    %c0_i32 = arith.constant 0 : i32
    %c0_i32_0 = arith.constant 0 : i32
    return %arg0, %c0_i32 : i32, i32
  }
  func.func @transform_2(%arg0: i32) -> (i32, i32) {
    %c0_i32 = arith.constant 0 : i32
    %c0_i32_0 = arith.constant 0 : i32
    %c0_i32_1 = arith.constant 0 : i32
    return %c0_i32, %c0_i32_0 : i32, i32
  }
  func.func @transform_3(%arg0: i32) -> (i32, i32) {
    %c0_i32 = arith.constant 0 : i32
    %c0_i32_0 = arith.constant 0 : i32
    %c0_i32_1 = arith.constant 0 : i32
    return %c0_i32, %c0_i32_0 : i32, i32
  }
  func.func @transform_4(%arg0: i32) -> (i32, i32) {
    %c0_i32 = arith.constant 0 : i32
    %c0_i32_0 = arith.constant 0 : i32
    %c0_i32_1 = arith.constant 0 : i32
    return %c0_i32, %c0_i32_0 : i32, i32
  }
  func.func @transform_5(%arg0: i32) -> (i32, i32) {
    %c0_i32 = arith.constant 0 : i32
    %c0_i32_0 = arith.constant 0 : i32
    %c0_i32_1 = arith.constant 0 : i32
    return %c0_i32, %c0_i32_0 : i32, i32
  }
}

</mosaic_0001>

<bundles_post_ra>
// kernel: tpu_custom_call.1
= control target key start
LH: loop header
LB: loop body
LE: loop exit
PB: predicated region body
PF: predicated region fallthrough
CT: control target
= control target key end

     0   :  { %10 = vsyncpa [#allocation4], 0  ;;  %s3867_s0 = inlined_call_operand.hbm [shape: bf16[2,1024], index: 0, kind: input, shape index: {}]   ;;  %s3868_s1 = inlined_call_operand.hbm [shape: bf16[1024,512], index: 1, kind: input, shape index: {}]   ;;  %s3869_s2 = inlined_call_operand.hbm [shape: f32[1,512], index: 2, kind: input, shape index: {}]   ;;  %s3870_s3 = inlined_call_operand.hbm [shape: f32[512,128], index: 3, kind: input, shape index: {}]   ;;  %s3871_s4 = inlined_call_operand.vmem [shape: f32[1,128], index: 4, kind: input, shape index: {}]   ;;  %s3872_s5 = inlined_call_operand.hbm [shape: f32[2,128], index: 5, kind: output, shape index: {}]  }
   0x1   :  { %11 = vsyncpa [#allocation7], 0 }
   0x2   :  { %12 = vsyncpa [#allocation10], 0  ;;  %s29_s20 = sshll.u32 %s3868_s1, 4  ;;  %s30_s20 = int_to_ptr.hbm [resolvable:$true] %s29_s20 }
   0x3   :  { %13 = vsyncpa [#allocation5], 0  ;;  %s3720_s21 = smov [#allocation6]   ;;  %s19_s25 = sshll.u32 %s3867_s0, 4  ;;  %s20_s25 = int_to_ptr.hbm [resolvable:$true] %s19_s25 }
   0x4   :  { %s31_s22 = sshll.u32 %s3720_s21, 4  ;;  %s3721_s26 = smov 256   ;;  %s32_s22 = int_to_ptr.vmem [resolvable:$true] %s31_s22 }
   0x5   :  { %s3722_s27 = smov 16   ;;  %s3723_s28 = smov [#allocation3]  }
   0x6   :  { %37 = dma.hbm_to_vmem [thread:$0]  %s30_s20, 32768, %s32_s22, [#allocation7], %s3721_s26, %s3721_s26, %s3722_s27  }
   0x7   :  { %s21_s29 = sshll.u32 %s3723_s28, 4  ;;  %s43_s7 = sshll.u32 %s3869_s2, 4  ;;  %s22_s29 = int_to_ptr.vmem [resolvable:$true] %s21_s29  ;;  %s44_s7 = int_to_ptr.hbm [resolvable:$true] %s43_s7 }
   0x8   :  { %24 = dma.hbm_to_vmem [thread:$0]  %s20_s25, 128, %s22_s29, [#allocation4]  }
   0x9   :  { %s53_s9 = sshll.u32 %s3870_s3, 4  ;;  %s3724_s10 = smov [#allocation8]   ;;  %s54_s9 = int_to_ptr.hbm [resolvable:$true] %s53_s9 }
   0xa   :  { %s45_s11 = sshll.u32 %s3724_s10, 4  ;;  %s3725_s0 = smov [#allocation9]   ;;  %s46_s11 = int_to_ptr.vmem [resolvable:$true] %s45_s11 }
   0xb   :  { %48 = dma.hbm_to_vmem [thread:$0]  %s44_s7, 64, %s46_s11, [#allocation7]  }
   0xc   :  { %s55_s12 = sshll.u32 %s3725_s0, 4  ;;  %s3726_s13 = smov 128   ;;  %s56_s12 = int_to_ptr.vmem [resolvable:$true] %s55_s12 }
   0xd   :  { %s3727_s14 = smov 8  }
   0xe   :  { %61 = dma.hbm_to_vmem [thread:$0]  %s54_s9, 8192, %s56_s12, [#allocation10], %s3726_s13, %s3726_s13, %s3727_s14  }
   0xf   :  { %3712 = dma.done.wait [#allocation4], 128  }
  0x10   :  { %3713 = vsyncadd [#allocation4], 4294967168 }
  0x11   :  { %3714 = dma.done.wait [#allocation7], 32832  }
  0x12   :  { %3715 = vsyncadd [#allocation7], 4294934464 }
  0x13   :  { %3716 = dma.done.wait [#allocation10], 8192  }
  0x14   :  { %3717 = vsyncadd [#allocation10], 4294959104  ;;  %v2403_v0 = vld [vmem:[#allocation6 + $0xe0] sm:$0xf]  ;;  %v3344_v1 = vld [vmem:[#allocation6 + $0xec] sm:$0xf0] }
  0x15   :  { %v2531_v2 = vld [vmem:[#allocation6 + $0x1e0] sm:$0xf]  ;;  %v2404_v3 = vor.u32 %v3344_v1, %v2403_v0  ;;  %v3376_v4 = vld [vmem:[#allocation6 + $0x1ec] sm:$0xf0]  ;;  %vm2064_vm0 = vcmask 1041408   ;;  %vm2066_vm1 = vcmask 1045508  }
  0x16   :  { %v2659_v5 = vld [vmem:[#allocation6 + $0x2e0] sm:$0xf]  ;;  %v3408_v6 = vld [vmem:[#allocation6 + $0x2ec] sm:$0xf0]  ;;  %v2532_v7 = vor.u32 %v3376_v4, %v2531_v2  ;;  %vm2068_vm2 = vcmask 1043456   ;;  %s2277_s18 = sshll.u32 %s3872_s5, 4  ;;  %s2278_s18 = int_to_ptr.hbm [resolvable:$true] %s2277_s18 }
  0x17   :  { %v2660_v8 = vor.u32 %v3408_v6, %v2659_v5  ;;  %v2787_v9 = vld [vmem:[#allocation6 + $0x3e0] sm:$0xf]  ;;  %v3440_v10 = vld [vmem:[#allocation6 + $0x3ec] sm:$0xf0]  ;;  %1641 = vmatpush.bf16.msra.mxu0 %v2404_v3 }
  0x18   :  { %v2387_v11 = vld [vmem:[#allocation6 + $0xc0] sm:$0xf]  ;;  %v2788_v12 = vor.u32 %v3440_v10, %v2787_v9  ;;  %v3340_v13 = vld [vmem:[#allocation6 + $0xcc] sm:$0xf0]  ;;  %1654 = vmatpush.bf16.msra.mxu1 %v2532_v7 }
  0x19   :  { %v2515_v14 = vld [vmem:[#allocation6 + $0x1c0] sm:$0xf]  ;;  %v3372_v15 = vld [vmem:[#allocation6 + $0x1cc] sm:$0xf0]  ;;  %1667 = vmatpush.bf16.msra.mxu2 %v2660_v8  ;;  %v2388_v16 = vor.u32 %v3340_v13, %v2387_v11 }
  0x1a   :  { %v2516_v17 = vor.u32 %v3372_v15, %v2515_v14  ;;  %v2643_v18 = vld [vmem:[#allocation6 + $0x2c0] sm:$0xf]  ;;  %v3404_v19 = vld [vmem:[#allocation6 + $0x2cc] sm:$0xf0]  ;;  %1680 = vmatpush.bf16.msra.mxu3 %v2788_v12 }
  0x1b   :  { %v2771_v20 = vld [vmem:[#allocation6 + $0x3c0] sm:$0xf]  ;;  %v2644_v21 = vor.u32 %v3404_v19, %v2643_v18  ;;  %v3436_v22 = vld [vmem:[#allocation6 + $0x3cc] sm:$0xf0]  ;;  %1642 = vmatpush.bf16.msra.mxu0 %v2388_v16 }
  0x1c   :  { %v2371_v23 = vld [vmem:[#allocation6 + $0xa0] sm:$0xf]  ;;  %v3336_v24 = vld [vmem:[#allocation6 + $0xac] sm:$0xf0]  ;;  %v2772_v25 = vor.u32 %v3436_v22, %v2771_v20  ;;  %1655 = vmatpush.bf16.msra.mxu1 %v2516_v17 }
  0x1d   :  { %v2499_v26 = vld [vmem:[#allocation6 + $0x1a0] sm:$0xf]  ;;  %v3368_v27 = vld [vmem:[#allocation6 + $0x1ac] sm:$0xf0]  ;;  %v2372_v29 = vor.u32 %v3336_v24, %v2371_v23  ;;  %1668 = vmatpush.bf16.msra.mxu2 %v2644_v21 }
  0x1e   :  { %v2627_v28 = vld [vmem:[#allocation6 + $0x2a0] sm:$0xf]  ;;  %v3400_v30 = vld [vmem:[#allocation6 + $0x2ac] sm:$0xf0]  ;;  %v2500_v33 = vor.u32 %v3368_v27, %v2499_v26  ;;  %1681 = vmatpush.bf16.msra.mxu3 %v2772_v25 }
  0x1f   :  { %v2755_v31 = vld [vmem:[#allocation6 + $0x3a0] sm:$0xf]  ;;  %v3432_v32 = vld [vmem:[#allocation6 + $0x3ac] sm:$0xf0]  ;;  %v2628_v34 = vor.u32 %v3400_v30, %v2627_v28  ;;  %1643 = vmatpush.bf16.msra.mxu0 %v2372_v29 }
  0x20   :  { %v2355_v35 = vld [vmem:[#allocation6 + $0x80] sm:$0xf]  ;;  %v3332_v36 = vld [vmem:[#allocation6 + $0x8c] sm:$0xf0]  ;;  %v2756_v38 = vor.u32 %v3432_v32, %v2755_v31  ;;  %1656 = vmatpush.bf16.msra.mxu1 %v2500_v33 }
  0x21   :  { %v2483_v37 = vld [vmem:[#allocation6 + $0x180] sm:$0xf]  ;;  %v3364_v39 = vld [vmem:[#allocation6 + $0x18c] sm:$0xf0]  ;;  %v2356_v44 = vor.u32 %v3332_v36, %v2355_v35  ;;  %1669 = vmatpush.bf16.msra.mxu2 %v2628_v34 }
  0x22   :  { %v2611_v40 = vld [vmem:[#allocation6 + $0x280] sm:$0xf]  ;;  %v3396_v41 = vld [vmem:[#allocation6 + $0x28c] sm:$0xf0]  ;;  %v2484_v45 = vor.u32 %v3364_v39, %v2483_v37  ;;  %1682 = vmatpush.bf16.msra.mxu3 %v2756_v38 }
  0x23   :  { %v2739_v42 = vld [vmem:[#allocation6 + $0x380] sm:$0xf]  ;;  %v3428_v43 = vld [vmem:[#allocation6 + $0x38c] sm:$0xf0]  ;;  %v2612_v46 = vor.u32 %v3396_v41, %v2611_v40  ;;  %1644 = vmatpush.bf16.msra.mxu0 %v2356_v44 }
  0x24   :  { %v2339_v47 = vld [vmem:[#allocation6 + $0x60] sm:$0xf]  ;;  %v3328_v48 = vld [vmem:[#allocation6 + $0x6c] sm:$0xf0]  ;;  %v2740_v50 = vor.u32 %v3428_v43, %v2739_v42  ;;  %1657 = vmatpush.bf16.msra.mxu1 %v2484_v45 }
  0x25   :  { %v2467_v49 = vld [vmem:[#allocation6 + $0x160] sm:$0xf]  ;;  %v3360_v51 = vld [vmem:[#allocation6 + $0x16c] sm:$0xf0]  ;;  %v2340_v56 = vor.u32 %v3328_v48, %v2339_v47  ;;  %1670 = vmatpush.bf16.msra.mxu2 %v2612_v46 }
  0x26   :  { %v2595_v52 = vld [vmem:[#allocation6 + $0x260] sm:$0xf]  ;;  %v3392_v53 = vld [vmem:[#allocation6 + $0x26c] sm:$0xf0]  ;;  %v2468_v57 = vor.u32 %v3360_v51, %v2467_v49  ;;  %1683 = vmatpush.bf16.msra.mxu3 %v2740_v50 }
  0x27   :  { %v2723_v54 = vld [vmem:[#allocation6 + $0x360] sm:$0xf]  ;;  %v3424_v55 = vld [vmem:[#allocation6 + $0x36c] sm:$0xf0]  ;;  %v2596_v58 = vor.u32 %v3392_v53, %v2595_v52  ;;  %1645 = vmatpush.bf16.msra.mxu0 %v2340_v56 }
  0x28   :  { %v2323_v59 = vld [vmem:[#allocation6 + $0x40] sm:$0xf]  ;;  %v3324_v60 = vld [vmem:[#allocation6 + $0x4c] sm:$0xf0]  ;;  %v2724_v62 = vor.u32 %v3424_v55, %v2723_v54  ;;  %1658 = vmatpush.bf16.msra.mxu1 %v2468_v57 }
  0x29   :  { %v2451_v61 = vld [vmem:[#allocation6 + $0x140] sm:$0xf]  ;;  %v3356_v63 = vld [vmem:[#allocation6 + $0x14c] sm:$0xf0]  ;;  %v2324_v4 = vor.u32 %v3324_v60, %v2323_v59  ;;  %1671 = vmatpush.bf16.msra.mxu2 %v2596_v58  ;;  %v86_v59 = vld [vmem:[#allocation3] sm:$0xff] }
  0x2a   :  { %v2579_v0 = vld [vmem:[#allocation6 + $0x240] sm:$0xf]  ;;  %v3388_v1 = vld [vmem:[#allocation6 + $0x24c] sm:$0xf0]  ;;  %v2452_v5 = vor.u32 %v3356_v63, %v2451_v61  ;;  %1684 = vmatpush.bf16.msra.mxu3 %v2724_v62  ;;  %344 = vst [vmem:[#allocation1] ss:$9 sm:$0xff] %v86_v59 }
  0x2b   :  { %v2707_v2 = vld [vmem:[#allocation6 + $0x340] sm:$0xf]  ;;  %v3420_v3 = vld [vmem:[#allocation6 + $0x34c] sm:$0xf0]  ;;  %v2580_v6 = vor.u32 %v3388_v1, %v2579_v0  ;;  %1646 = vmatpush.bf16.msra.mxu0 %v2324_v4 }
  0x2c   :  { %v2307_v7 = vld [vmem:[#allocation6 + $0x20] sm:$0xf]  ;;  %v3320_v8 = vld [vmem:[#allocation6 + $0x2c] sm:$0xf0]  ;;  %v2708_v10 = vor.u32 %v3420_v3, %v2707_v2  ;;  %1659 = vmatpush.bf16.msra.mxu1 %v2452_v5 }
  0x2d   :  { %v2435_v9 = vld [vmem:[#allocation6 + $0x120] sm:$0xf]  ;;  %v3352_v11 = vld [vmem:[#allocation6 + $0x12c] sm:$0xf0]  ;;  %v2308_v16 = vor.u32 %v3320_v8, %v2307_v7  ;;  %1672 = vmatpush.bf16.msra.mxu2 %v2580_v6 }
  0x2e   :  { %v2563_v12 = vld [vmem:[#allocation6 + $0x220] sm:$0xf]  ;;  %v3384_v13 = vld [vmem:[#allocation6 + $0x22c] sm:$0xf0]  ;;  %v2436_v19 = vor.u32 %v3352_v11, %v2435_v9  ;;  %1685 = vmatpush.bf16.msra.mxu3 %v2708_v10 }
  0x2f   :  { %v2691_v14 = vld [vmem:[#allocation6 + $0x320] sm:$0xf]  ;;  %v3416_v15 = vld [vmem:[#allocation6 + $0x32c] sm:$0xf0]  ;;  %v2564_v20 = vor.u32 %v3384_v13, %v2563_v12  ;;  %1647 = vmatpush.bf16.msra.mxu0 %v2308_v16 }
  0x30   :  { %v2291_v17 = vld [vmem:[#allocation6] sm:$0xf]  ;;  %v3316_v18 = vld [vmem:[#allocation6 + $0xc] sm:$0xf0]  ;;  %v2692_v24 = vor.u32 %v3416_v15, %v2691_v14  ;;  %1660 = vmatpush.bf16.msra.mxu1 %v2436_v19 }
  0x31   :  { %v2419_v21 = vld [vmem:[#allocation6 + $0x100] sm:$0xf]  ;;  %v3348_v22 = vld [vmem:[#allocation6 + $0x10c] sm:$0xf0]  ;;  %v2292_v31 = vor.u32 %v3316_v18, %v2291_v17  ;;  %1673 = vmatpush.bf16.msra.mxu2 %v2564_v20 }
  0x32   :  { %v2547_v23 = vld [vmem:[#allocation6 + $0x200] sm:$0xf]  ;;  %v3380_v25 = vld [vmem:[#allocation6 + $0x20c] sm:$0xf0]  ;;  %v2420_v35 = vor.u32 %v3348_v22, %v2419_v21  ;;  %1686 = vmatpush.bf16.msra.mxu3 %v2692_v24 }
  0x33   :  { %v2675_v26 = vld [vmem:[#allocation6 + $0x300] sm:$0xf]  ;;  %v3412_v27 = vld [vmem:[#allocation6 + $0x30c] sm:$0xf0]  ;;  %v2548_v36 = vor.u32 %v3380_v25, %v2547_v23  ;;  %1648 = vmatpush.bf16.msra.mxu0 %v2292_v31 }
  0x34   :  { %v2915_v28 = vld [vmem:[#allocation6 + $0x4e0] sm:$0xf]  ;;  %v3472_v29 = vld [vmem:[#allocation6 + $0x4ec] sm:$0xf0]  ;;  %v2676_v39 = vor.u32 %v3412_v27, %v2675_v26  ;;  %1661 = vmatpush.bf16.msra.mxu1 %v2420_v35 }
  0x35   :  { %v3043_v30 = vld [vmem:[#allocation6 + $0x5e0] sm:$0xf]  ;;  %v3504_v32 = vld [vmem:[#allocation6 + $0x5ec] sm:$0xf0]  ;;  %v2916_v40 = vor.u32 %v3472_v29, %v2915_v28  ;;  %1674 = vmatpush.bf16.msra.mxu2 %v2548_v36 }
  0x36   :  { %v3171_v33 = vld [vmem:[#allocation6 + $0x6e0] sm:$0xf]  ;;  %v3536_v34 = vld [vmem:[#allocation6 + $0x6ec] sm:$0xf0]  ;;  %v3044_v41 = vor.u32 %v3504_v32, %v3043_v30  ;;  %1687 = vmatpush.bf16.msra.mxu3 %v2676_v39 }
  0x37   :  { %v3299_v37 = vld [vmem:[#allocation6 + $0x7e0] sm:$0xf]  ;;  %v3568_v38 = vld [vmem:[#allocation6 + $0x7ec] sm:$0xf0]  ;;  %v3172_v42 = vor.u32 %v3536_v34, %v3171_v33  ;;  %1693 = vmatpush.bf16.msrb.mxu0 %v2916_v40 }
  0x38   :  { %v2899_v43 = vld [vmem:[#allocation6 + $0x4c0] sm:$0xf]  ;;  %v3468_v44 = vld [vmem:[#allocation6 + $0x4cc] sm:$0xf0]  ;;  %v3300_v46 = vor.u32 %v3568_v38, %v3299_v37  ;;  %1706 = vmatpush.bf16.msrb.mxu1 %v3044_v41 }
  0x39   :  { %v3027_v45 = vld [vmem:[#allocation6 + $0x5c0] sm:$0xf]  ;;  %v3500_v47 = vld [vmem:[#allocation6 + $0x5cc] sm:$0xf0]  ;;  %v2900_v52 = vor.u32 %v3468_v44, %v2899_v43  ;;  %1719 = vmatpush.bf16.msrb.mxu2 %v3172_v42 }
  0x3a   :  { %v3155_v48 = vld [vmem:[#allocation6 + $0x6c0] sm:$0xf]  ;;  %v3532_v49 = vld [vmem:[#allocation6 + $0x6cc] sm:$0xf0]  ;;  %v3028_v55 = vor.u32 %v3500_v47, %v3027_v45  ;;  %1732 = vmatpush.bf16.msrb.mxu3 %v3300_v46 }
  0x3b   :  { %v3283_v50 = vld [vmem:[#allocation6 + $0x7c0] sm:$0xf]  ;;  %v3564_v51 = vld [vmem:[#allocation6 + $0x7cc] sm:$0xf0]  ;;  %v3156_v56 = vor.u32 %v3532_v49, %v3155_v48  ;;  %1694 = vmatpush.bf16.msrb.mxu0 %v2900_v52 }
  0x3c   :  { %v2883_v53 = vld [vmem:[#allocation6 + $0x4a0] sm:$0xf]  ;;  %v3464_v54 = vld [vmem:[#allocation6 + $0x4ac] sm:$0xf0]  ;;  %v3284_v60 = vor.u32 %v3564_v51, %v3283_v50  ;;  %1707 = vmatpush.bf16.msrb.mxu1 %v3028_v55 }
  0x3d   :  { %v3011_v57 = vld [vmem:[#allocation6 + $0x5a0] sm:$0xf]  ;;  %v3496_v58 = vld [vmem:[#allocation6 + $0x5ac] sm:$0xf0]  ;;  %v2884_v1 = vor.u32 %v3464_v54, %v2883_v53  ;;  %1720 = vmatpush.bf16.msrb.mxu2 %v3156_v56 }
  0x3e   :  { %v3139_v61 = vld [vmem:[#allocation6 + $0x6a0] sm:$0xf]  ;;  %v3528_v62 = vld [vmem:[#allocation6 + $0x6ac] sm:$0xf0]  ;;  %v3012_v2 = vor.u32 %v3496_v58, %v3011_v57  ;;  %1733 = vmatpush.bf16.msrb.mxu3 %v3284_v60 }
  0x3f   :  { %v3267_v63 = vld [vmem:[#allocation6 + $0x7a0] sm:$0xf]  ;;  %v3560_v0 = vld [vmem:[#allocation6 + $0x7ac] sm:$0xf0]  ;;  %v3140_v3 = vor.u32 %v3528_v62, %v3139_v61  ;;  %1695 = vmatpush.bf16.msrb.mxu0 %v2884_v1  ;;  %v3342_v1 = vld [vmem:[#allocation6 + $0xe4] sm:$0xf] }
  0x40   :  { %v2867_v4 = vld [vmem:[#allocation6 + $0x480] sm:$0xf]  ;;  %v3460_v5 = vld [vmem:[#allocation6 + $0x48c] sm:$0xf0]  ;;  %v3268_v7 = vor.u32 %v3560_v0, %v3267_v63  ;;  %1708 = vmatpush.bf16.msrb.mxu1 %v3012_v2  ;;  %v2405_v2 = vld [vmem:[#allocation6 + $0xf0] sm:$0xf0] }
  0x41   :  { %v2995_v6 = vld [vmem:[#allocation6 + $0x580] sm:$0xf]  ;;  %v3492_v8 = vld [vmem:[#allocation6 + $0x58c] sm:$0xf0]  ;;  %v2868_v14 = vor.u32 %v3460_v5, %v2867_v4  ;;  %1721 = vmatpush.bf16.msrb.mxu2 %v3140_v3  ;;  %v3374_v3 = vld [vmem:[#allocation6 + $0x1e4] sm:$0xf] }
  0x42   :  { %v3123_v9 = vld [vmem:[#allocation6 + $0x680] sm:$0xf]  ;;  %v3524_v10 = vld [vmem:[#allocation6 + $0x68c] sm:$0xf0]  ;;  %v2996_v18 = vor.u32 %v3492_v8, %v2995_v6  ;;  %1734 = vmatpush.bf16.msrb.mxu3 %v3268_v7  ;;  %v2533_v5 = vld [vmem:[#allocation6 + $0x1f0] sm:$0xf0] }
  0x43   :  { %v3251_v11 = vld [vmem:[#allocation6 + $0x780] sm:$0xf]  ;;  %v3556_v12 = vld [vmem:[#allocation6 + $0x78c] sm:$0xf0]  ;;  %v3124_v19 = vor.u32 %v3524_v10, %v3123_v9  ;;  %1696 = vmatpush.bf16.msrb.mxu0 %v2868_v14  ;;  %v3406_v6 = vld [vmem:[#allocation6 + $0x2e4] sm:$0xf]  ;;  %v2536_v14 = vor.u32 %v3374_v3, %v2533_v5 }
  0x44   :  { %v2851_v13 = vld [vmem:[#allocation6 + $0x460] sm:$0xf]  ;;  %v3456_v15 = vld [vmem:[#allocation6 + $0x46c] sm:$0xf0]  ;;  %v3252_v23 = vor.u32 %v3556_v12, %v3251_v11  ;;  %1709 = vmatpush.bf16.msrb.mxu1 %v2996_v18  ;;  %v2661_v7 = vld [vmem:[#allocation6 + $0x2f0] sm:$0xf0] }
  0x45   :  { %v2979_v16 = vld [vmem:[#allocation6 + $0x560] sm:$0xf]  ;;  %v3488_v17 = vld [vmem:[#allocation6 + $0x56c] sm:$0xf0]  ;;  %v2852_v29 = vor.u32 %v3456_v15, %v2851_v13  ;;  %1722 = vmatpush.bf16.msrb.mxu2 %v3124_v19  ;;  %v3438_v10 = vld [vmem:[#allocation6 + $0x3e4] sm:$0xf]  ;;  %v2408_v13 = vor.u32 %v3342_v1, %v2405_v2  ;;  %v2664_v15 = vor.u32 %v3406_v6, %v2661_v7 }
  0x46   :  { %v3771_v20 = vld [vmem:[#allocation1 + $0x12] sm:$0xff]  ;;  %v3773_v21 = vld [vmem:[#allocation1] sm:$0xff]  ;;  %v3778_v26 = vld [vmem:[#allocation1 + $0x9] sm:$0xff]  ;;  %v2980_v30 = vor.u32 %v3488_v17, %v2979_v16  ;;  %1735 = vmatpush.bf16.msrb.mxu3 %v3252_v23 }
  0x47   :  { %v3775_v22 = vld [vmem:[#allocation1 + $0x1b] sm:$0xff]  ;;  %v3107_v24 = vld [vmem:[#allocation6 + $0x660] sm:$0xf]  ;;  %1675 = vmatmul.bf16.vlgmr.msra.gmra.mxu2 %v3771_v20  ;;  %1649 = vmatmul.bf16.vlgmr.msra.gmra.mxu0 %v3773_v21  ;;  %v2789_v11 = vld [vmem:[#allocation6 + $0x3f0] sm:$0xf0] }
  0x48   :  { %v3520_v25 = vld [vmem:[#allocation6 + $0x66c] sm:$0xf0]  ;;  %v3235_v27 = vld [vmem:[#allocation6 + $0x760] sm:$0xf]  ;;  %1688 = vmatmul.bf16.vlgmr.msra.gmra.mxu3 %v3775_v22  ;;  %1662 = vmatmul.bf16.vlgmr.msra.gmra.mxu1 %v3778_v26  ;;  %v3338_v16 = vld [vmem:[#allocation6 + $0xc4] sm:$0xf]  ;;  %v2792_v19 = vor.u32 %v3438_v10, %v2789_v11 }
  0x49   :  { %v3552_v28 = vld [vmem:[#allocation6 + $0x76c] sm:$0xf0]  ;;  %v3108_v31 = vor.u32 %v3520_v25, %v3107_v24  ;;  %v2835_v32 = vld [vmem:[#allocation6 + $0x440] sm:$0xf]  ;;  %1697 = vmatpush.bf16.msrb.mxu0 %v2852_v29  ;;  %1710 = vmatpush.bf16.msrb.mxu1 %v2980_v30  ;;  %v2389_v17 = vld [vmem:[#allocation6 + $0xd0] sm:$0xf0] }
  0x4a   :  { %v3452_v33 = vld [vmem:[#allocation6 + $0x44c] sm:$0xf0]  ;;  %v2963_v34 = vld [vmem:[#allocation6 + $0x540] sm:$0xf]  ;;  %v3236_v35 = vor.u32 %v3552_v28, %v3235_v27  ;;  %v3370_v18 = vld [vmem:[#allocation6 + $0x1c4] sm:$0xf]  ;;  %v2392_v30 = vor.u32 %v3338_v16, %v2389_v17 }
  0x4b   :  { %v3484_v36 = vld [vmem:[#allocation6 + $0x54c] sm:$0xf0]  ;;  %v3091_v37 = vld [vmem:[#allocation6 + $0x640] sm:$0xf]  ;;  %v2836_v41 = vor.u32 %v3452_v33, %v2835_v32  ;;  %1723 = vmatpush.bf16.msrb.mxu2 %v3108_v31  ;;  %v2517_v23 = vld [vmem:[#allocation6 + $0x1d0] sm:$0xf0] }
  0x4c   :  { %v3516_v38 = vld [vmem:[#allocation6 + $0x64c] sm:$0xf0]  ;;  %v3219_v39 = vld [vmem:[#allocation6 + $0x740] sm:$0xf]  ;;  %v2964_v42 = vor.u32 %v3484_v36, %v2963_v34  ;;  %1736 = vmatpush.bf16.msrb.mxu3 %v3236_v35  ;;  %v3402_v24 = vld [vmem:[#allocation6 + $0x2c4] sm:$0xf]  ;;  %v2520_v34 = vor.u32 %v3370_v18, %v2517_v23 }
  0x4d   :  { %v3548_v40 = vld [vmem:[#allocation6 + $0x74c] sm:$0xf0]  ;;  %v3092_v43 = vor.u32 %v3516_v38, %v3091_v37  ;;  %v2819_v44 = vld [vmem:[#allocation6 + $0x420] sm:$0xf]  ;;  %1698 = vmatpush.bf16.msrb.mxu0 %v2836_v41  ;;  %v2645_v25 = vld [vmem:[#allocation6 + $0x2d0] sm:$0xf0] }
  0x4e   :  { %v3448_v45 = vld [vmem:[#allocation6 + $0x42c] sm:$0xf0]  ;;  %v2947_v46 = vld [vmem:[#allocation6 + $0x520] sm:$0xf]  ;;  %v3220_v47 = vor.u32 %v3548_v40, %v3219_v39  ;;  %1711 = vmatpush.bf16.msrb.mxu1 %v2964_v42  ;;  %v3434_v27 = vld [vmem:[#allocation6 + $0x3c4] sm:$0xf]  ;;  %v2648_v35 = vor.u32 %v3402_v24, %v2645_v25 }
  0x4f   :  { %v3480_v48 = vld [vmem:[#allocation6 + $0x52c] sm:$0xf0]  ;;  %v3075_v49 = vld [vmem:[#allocation6 + $0x620] sm:$0xf]  ;;  %v2820_v53 = vor.u32 %v3448_v45, %v2819_v44  ;;  %1724 = vmatpush.bf16.msrb.mxu2 %v3092_v43  ;;  %v2773_v28 = vld [vmem:[#allocation6 + $0x3d0] sm:$0xf0] }
  0x50   :  { %v3512_v50 = vld [vmem:[#allocation6 + $0x62c] sm:$0xf0]  ;;  %v3203_v51 = vld [vmem:[#allocation6 + $0x720] sm:$0xf]  ;;  %v2948_v56 = vor.u32 %v3480_v48, %v2947_v46  ;;  %1737 = vmatpush.bf16.msrb.mxu3 %v3220_v47  ;;  %v3783_v29 = vld [vmem:[#allocation1 + $0x36] sm:$0xff]  ;;  %v2776_v39 = vor.u32 %v3434_v27, %v2773_v28 }
  0x51   :  { %v3544_v52 = vld [vmem:[#allocation6 + $0x72c] sm:$0xf0]  ;;  %v2803_v54 = vld [vmem:[#allocation6 + $0x400] sm:$0xf]  ;;  %v3076_v57 = vor.u32 %v3512_v50, %v3075_v49  ;;  %1699 = vmatpush.bf16.msrb.mxu0 %v2820_v53  ;;  %v3785_v31 = vld [vmem:[#allocation1 + $0x24] sm:$0xff] }
  0x52   :  { %v3444_v55 = vld [vmem:[#allocation6 + $0x40c] sm:$0xf0]  ;;  %v2931_v58 = vld [vmem:[#allocation6 + $0x500] sm:$0xf]  ;;  %v3204_v61 = vor.u32 %v3544_v52, %v3203_v51  ;;  %1712 = vmatpush.bf16.msrb.mxu1 %v2948_v56  ;;  %v3334_v33 = vld [vmem:[#allocation6 + $0xa4] sm:$0xf] }
  0x53   :  { %v3476_v59 = vld [vmem:[#allocation6 + $0x50c] sm:$0xf0]  ;;  %v3059_v60 = vld [vmem:[#allocation6 + $0x600] sm:$0xf]  ;;  %v2804_v4 = vor.u32 %v3444_v55, %v2803_v54  ;;  %1725 = vmatpush.bf16.msrb.mxu2 %v3076_v57  ;;  %v2373_v36 = vld [vmem:[#allocation6 + $0xb0] sm:$0xf0] }
  0x54   :  { %v3508_v62 = vld [vmem:[#allocation6 + $0x60c] sm:$0xf0]  ;;  %v3187_v63 = vld [vmem:[#allocation6 + $0x700] sm:$0xf]  ;;  %v2932_v8 = vor.u32 %v3476_v59, %v2931_v58  ;;  %1738 = vmatpush.bf16.msrb.mxu3 %v3204_v61  ;;  %v3366_v37 = vld [vmem:[#allocation6 + $0x1a4] sm:$0xf]  ;;  %v2376_v45 = vor.u32 %v3334_v33, %v2373_v36 }
  0x55   :  { %v3540_v0 = vld [vmem:[#allocation6 + $0x70c] sm:$0xf0]  ;;  %v3060_v9 = vor.u32 %v3508_v62, %v3059_v60  ;;  %1700 = vmatpush.bf16.msrb.mxu0 %v2804_v4  ;;  %v3789_v38 = vld [vmem:[#allocation1 + $0x2d] sm:$0xff]  ;;  %v2501_v40 = vld [vmem:[#allocation6 + $0x1b0] sm:$0xf0] }
  0x56   :  { %v3188_v12 = vor.u32 %v3540_v0, %v3187_v63  ;;  %1713 = vmatpush.bf16.msrb.mxu1 %v2932_v8  ;;  %v3787_v32 = vld [vmem:[#allocation1 + $0x3f] sm:$0xff]  ;;  %v3398_v41 = vld [vmem:[#allocation6 + $0x2a4] sm:$0xf]  ;;  %v2504_v46 = vor.u32 %v3366_v37, %v2501_v40 }
  0x57   :  { %1726 = vmatpush.bf16.msrb.mxu2 %v3060_v9  ;;  %v2629_v42 = vld [vmem:[#allocation6 + $0x2b0] sm:$0xf0]  ;;  %v3430_v43 = vld [vmem:[#allocation6 + $0x3a4] sm:$0xf] }
  0x58   :  { %1739 = vmatpush.bf16.msrb.mxu3 %v3188_v12  ;;  %1701 = vmatmul.bf16.vlgmr.msrb.gmra.mxu0 %v3785_v31  ;;  %v2757_v44 = vld [vmem:[#allocation6 + $0x3b0] sm:$0xf0]  ;;  %v2632_v47 = vor.u32 %v3398_v41, %v2629_v42  ;;  %v3330_v48 = vld [vmem:[#allocation6 + $0x84] sm:$0xf] }
  0x59   :  { %1745 = vmatpush.bf16.msra.mxu0 %v2408_v13  ;;  %1714 = vmatmul.bf16.vlgmr.msrb.gmra.mxu1 %v3789_v38  ;;  %v2357_v49 = vld [vmem:[#allocation6 + $0x90] sm:$0xf0]  ;;  %v3362_v50 = vld [vmem:[#allocation6 + $0x184] sm:$0xf]  ;;  %v2760_v51 = vor.u32 %v3430_v43, %v2757_v44 }
  0x5a   :  { %1758 = vmatpush.bf16.msra.mxu1 %v2536_v14  ;;  %1727 = vmatmul.bf16.vlgmr.msrb.gmra.mxu2 %v3783_v29  ;;  %v2485_v52 = vld [vmem:[#allocation6 + $0x190] sm:$0xf0]  ;;  %v3394_v53 = vld [vmem:[#allocation6 + $0x284] sm:$0xf]  ;;  %v2360_v57 = vor.u32 %v3330_v48, %v2357_v49 }
  0x5b   :  { %1771 = vmatpush.bf16.msra.mxu2 %v2664_v15  ;;  %1740 = vmatmul.bf16.vlgmr.msrb.gmra.mxu3 %v3787_v32  ;;  %v2613_v54 = vld [vmem:[#allocation6 + $0x290] sm:$0xf0]  ;;  %v3426_v55 = vld [vmem:[#allocation6 + $0x384] sm:$0xf]  ;;  %v2488_v58 = vor.u32 %v3362_v50, %v2485_v52 }
  0x5c   :  { %1784 = vmatpush.bf16.msra.mxu3 %v2792_v19  ;;  %v2741_v56 = vld [vmem:[#allocation6 + $0x390] sm:$0xf0]  ;;  %v2616_v59 = vor.u32 %v3394_v53, %v2613_v54  ;;  %v3326_v60 = vld [vmem:[#allocation6 + $0x64] sm:$0xf] }
  0x5d   :  { %1746 = vmatpush.bf16.msra.mxu0 %v2392_v30  ;;  %v2341_v61 = vld [vmem:[#allocation6 + $0x70] sm:$0xf0]  ;;  %v3358_v62 = vld [vmem:[#allocation6 + $0x164] sm:$0xf]  ;;  %v2744_v63 = vor.u32 %v3426_v55, %v2741_v56 }
  0x5e   :  { %1759 = vmatpush.bf16.msra.mxu1 %v2520_v34  ;;  %v2469_v0 = vld [vmem:[#allocation6 + $0x170] sm:$0xf0]  ;;  %v3390_v1 = vld [vmem:[#allocation6 + $0x264] sm:$0xf]  ;;  %v2344_v5 = vor.u32 %v3326_v60, %v2341_v61 }
  0x5f   :  { %1772 = vmatpush.bf16.msra.mxu2 %v2648_v35  ;;  %v2597_v2 = vld [vmem:[#allocation6 + $0x270] sm:$0xf0]  ;;  %v3422_v3 = vld [vmem:[#allocation6 + $0x364] sm:$0xf]  ;;  %v2472_v6 = vor.u32 %v3358_v62, %v2469_v0 }
  0x60   :  { %1785 = vmatpush.bf16.msra.mxu3 %v2776_v39  ;;  %v2725_v4 = vld [vmem:[#allocation6 + $0x370] sm:$0xf0]  ;;  %v2600_v7 = vor.u32 %v3390_v1, %v2597_v2  ;;  %v3322_v8 = vld [vmem:[#allocation6 + $0x44] sm:$0xf] }
  0x61   :  { %1747 = vmatpush.bf16.msra.mxu0 %v2376_v45  ;;  %v2325_v9 = vld [vmem:[#allocation6 + $0x50] sm:$0xf0]  ;;  %v3354_v10 = vld [vmem:[#allocation6 + $0x144] sm:$0xf]  ;;  %v2728_v11 = vor.u32 %v3422_v3, %v2725_v4 }
  0x62   :  { %1760 = vmatpush.bf16.msra.mxu1 %v2504_v46  ;;  %v2453_v12 = vld [vmem:[#allocation6 + $0x150] sm:$0xf0]  ;;  %v3386_v13 = vld [vmem:[#allocation6 + $0x244] sm:$0xf]  ;;  %v2328_v17 = vor.u32 %v3322_v8, %v2325_v9 }
  0x63   :  { %1773 = vmatpush.bf16.msra.mxu2 %v2632_v47  ;;  %v2581_v14 = vld [vmem:[#allocation6 + $0x250] sm:$0xf0]  ;;  %v3418_v15 = vld [vmem:[#allocation6 + $0x344] sm:$0xf]  ;;  %v2456_v18 = vor.u32 %v3354_v10, %v2453_v12 }
  0x64   :  { %1786 = vmatpush.bf16.msra.mxu3 %v2760_v51  ;;  %v2709_v16 = vld [vmem:[#allocation6 + $0x350] sm:$0xf0]  ;;  %v2584_v19 = vor.u32 %v3386_v13, %v2581_v14  ;;  %v3318_v23 = vld [vmem:[#allocation6 + $0x24] sm:$0xf] }
  0x65   :  { %1748 = vmatpush.bf16.msra.mxu0 %v2360_v57  ;;  %v2309_v24 = vld [vmem:[#allocation6 + $0x30] sm:$0xf0]  ;;  %v3350_v25 = vld [vmem:[#allocation6 + $0x124] sm:$0xf]  ;;  %v2712_v27 = vor.u32 %v3418_v15, %v2709_v16 }
  0x66   :  { %1761 = vmatpush.bf16.msra.mxu1 %v2488_v58  ;;  %v2437_v28 = vld [vmem:[#allocation6 + $0x130] sm:$0xf0]  ;;  %v3382_v30 = vld [vmem:[#allocation6 + $0x224] sm:$0xf]  ;;  %v2312_v36 = vor.u32 %v3318_v23, %v2309_v24 }
  0x67   :  { %1774 = vmatpush.bf16.msra.mxu2 %v2616_v59  ;;  %v2565_v33 = vld [vmem:[#allocation6 + $0x230] sm:$0xf0]  ;;  %v3414_v34 = vld [vmem:[#allocation6 + $0x324] sm:$0xf]  ;;  %v2440_v41 = vor.u32 %v3350_v25, %v2437_v28 }
  0x68   :  { %1787 = vmatpush.bf16.msra.mxu3 %v2744_v63  ;;  %v2693_v35 = vld [vmem:[#allocation6 + $0x330] sm:$0xf0]  ;;  %v3314_v37 = vld [vmem:[#allocation6 + $0x4] sm:$0xf]  ;;  %v2568_v42 = vor.u32 %v3382_v30, %v2565_v33 }
  0x69   :  { %1749 = vmatpush.bf16.msra.mxu0 %v2344_v5  ;;  %v2293_v39 = vld [vmem:[#allocation6 + $0x10] sm:$0xf0]  ;;  %v3346_v40 = vld [vmem:[#allocation6 + $0x104] sm:$0xf]  ;;  %v2696_v46 = vor.u32 %v3414_v34, %v2693_v35 }
  0x6a   :  { %1762 = vmatpush.bf16.msra.mxu1 %v2472_v6  ;;  %v2421_v43 = vld [vmem:[#allocation6 + $0x110] sm:$0xf0]  ;;  %v3378_v44 = vld [vmem:[#allocation6 + $0x204] sm:$0xf]  ;;  %v2296_v52 = vor.u32 %v3314_v37, %v2293_v39 }
  0x6b   :  { %1775 = vmatpush.bf16.msra.mxu2 %v2600_v7  ;;  %v2549_v45 = vld [vmem:[#allocation6 + $0x210] sm:$0xf0]  ;;  %v3410_v47 = vld [vmem:[#allocation6 + $0x304] sm:$0xf]  ;;  %v2424_v56 = vor.u32 %v3346_v40, %v2421_v43 }
  0x6c   :  { %1788 = vmatpush.bf16.msra.mxu3 %v2728_v11  ;;  %v2677_v48 = vld [vmem:[#allocation6 + $0x310] sm:$0xf0]  ;;  %v3470_v49 = vld [vmem:[#allocation6 + $0x4e4] sm:$0xf]  ;;  %v2552_v57 = vor.u32 %v3378_v44, %v2549_v45 }
  0x6d   :  { %1750 = vmatpush.bf16.msra.mxu0 %v2328_v17  ;;  %v2917_v50 = vld [vmem:[#allocation6 + $0x4f0] sm:$0xf0]  ;;  %v3502_v51 = vld [vmem:[#allocation6 + $0x5e4] sm:$0xf]  ;;  %v2680_v60 = vor.u32 %v3410_v47, %v2677_v48 }
  0x6e   :  { %1763 = vmatpush.bf16.msra.mxu1 %v2456_v18  ;;  %v3045_v53 = vld [vmem:[#allocation6 + $0x5f0] sm:$0xf0]  ;;  %v3534_v54 = vld [vmem:[#allocation6 + $0x6e4] sm:$0xf]  ;;  %v2920_v61 = vor.u32 %v3470_v49, %v2917_v50 }
  0x6f   :  { %1776 = vmatpush.bf16.msra.mxu2 %v2584_v19  ;;  %v3173_v55 = vld [vmem:[#allocation6 + $0x6f0] sm:$0xf0]  ;;  %v3566_v58 = vld [vmem:[#allocation6 + $0x7e4] sm:$0xf]  ;;  %v3048_v62 = vor.u32 %v3502_v51, %v3045_v53 }
  0x70   :  { %1789 = vmatpush.bf16.msra.mxu3 %v2712_v27  ;;  %v3301_v59 = vld [vmem:[#allocation6 + $0x7f0] sm:$0xf0]  ;;  %v3176_v63 = vor.u32 %v3534_v54, %v3173_v55  ;;  %v3466_v0 = vld [vmem:[#allocation6 + $0x4c4] sm:$0xf] }
  0x71   :  { %1751 = vmatpush.bf16.msra.mxu0 %v2312_v36  ;;  %v2901_v1 = vld [vmem:[#allocation6 + $0x4d0] sm:$0xf0]  ;;  %v3498_v2 = vld [vmem:[#allocation6 + $0x5c4] sm:$0xf]  ;;  %v3304_v3 = vor.u32 %v3566_v58, %v3301_v59 }
  0x72   :  { %1764 = vmatpush.bf16.msra.mxu1 %v2440_v41  ;;  %v3029_v4 = vld [vmem:[#allocation6 + $0x5d0] sm:$0xf0]  ;;  %v3530_v5 = vld [vmem:[#allocation6 + $0x6c4] sm:$0xf]  ;;  %v2904_v9 = vor.u32 %v3466_v0, %v2901_v1 }
  0x73   :  { %1777 = vmatpush.bf16.msra.mxu2 %v2568_v42  ;;  %v3157_v6 = vld [vmem:[#allocation6 + $0x6d0] sm:$0xf0]  ;;  %v3562_v7 = vld [vmem:[#allocation6 + $0x7c4] sm:$0xf]  ;;  %v3032_v10 = vor.u32 %v3498_v2, %v3029_v4 }
  0x74   :  { %1790 = vmatpush.bf16.msra.mxu3 %v2696_v46  ;;  %v3285_v8 = vld [vmem:[#allocation6 + $0x7d0] sm:$0xf0]  ;;  %v3160_v11 = vor.u32 %v3530_v5, %v3157_v6  ;;  %v3462_v12 = vld [vmem:[#allocation6 + $0x4a4] sm:$0xf] }
  0x75   :  { %1752 = vmatpush.bf16.msra.mxu0 %v2296_v52  ;;  %v2885_v13 = vld [vmem:[#allocation6 + $0x4b0] sm:$0xf0]  ;;  %v3494_v14 = vld [vmem:[#allocation6 + $0x5a4] sm:$0xf]  ;;  %v3288_v15 = vor.u32 %v3562_v7, %v3285_v8 }
  0x76   :  { %1765 = vmatpush.bf16.msra.mxu1 %v2424_v56  ;;  %v3013_v16 = vld [vmem:[#allocation6 + $0x5b0] sm:$0xf0]  ;;  %v3526_v17 = vld [vmem:[#allocation6 + $0x6a4] sm:$0xf]  ;;  %v2888_v24 = vor.u32 %v3462_v12, %v2885_v13 }
  0x77   :  { %1778 = vmatpush.bf16.msra.mxu2 %v2552_v57  ;;  %v3141_v18 = vld [vmem:[#allocation6 + $0x6b0] sm:$0xf0]  ;;  %v3558_v19 = vld [vmem:[#allocation6 + $0x7a4] sm:$0xf]  ;;  %v3016_v25 = vor.u32 %v3494_v14, %v3013_v16 }
  0x78   :  { %1791 = vmatpush.bf16.msra.mxu3 %v2680_v60  ;;  %v3269_v23 = vld [vmem:[#allocation6 + $0x7b0] sm:$0xf0]  ;;  %1753 = vmatmul.bf16.vlgmr.msra.gmra.mxu0 %v3773_v21  ;;  %v3144_v27 = vor.u32 %v3526_v17, %v3141_v18  ;;  %v3458_v28 = vld [vmem:[#allocation6 + $0x484] sm:$0xf] }
  0x79   :  { %1797 = vmatpush.bf16.msrb.mxu0 %v2920_v61  ;;  %1766 = vmatmul.bf16.vlgmr.msra.gmra.mxu1 %v3778_v26  ;;  %v2869_v30 = vld [vmem:[#allocation6 + $0x490] sm:$0xf0]  ;;  %v3490_v33 = vld [vmem:[#allocation6 + $0x584] sm:$0xf]  ;;  %v3272_v34 = vor.u32 %v3558_v19, %v3269_v23 }
  0x7a   :  { %1810 = vmatpush.bf16.msrb.mxu1 %v3048_v62  ;;  %1779 = vmatmul.bf16.vlgmr.msra.gmra.mxu2 %v3771_v20  ;;  %v2997_v35 = vld [vmem:[#allocation6 + $0x590] sm:$0xf0]  ;;  %v3522_v36 = vld [vmem:[#allocation6 + $0x684] sm:$0xf]  ;;  %v2872_v41 = vor.u32 %v3458_v28, %v2869_v30  ;;  %v2411_v30 = vld [vmem:[#allocation6 + $0xe8] sm:$0xf] }
  0x7b   :  { %1823 = vmatpush.bf16.msrb.mxu2 %v3176_v63  ;;  %1792 = vmatmul.bf16.vlgmr.msra.gmra.mxu3 %v3775_v22  ;;  %v3125_v37 = vld [vmem:[#allocation6 + $0x690] sm:$0xf0]  ;;  %v3554_v39 = vld [vmem:[#allocation6 + $0x784] sm:$0xf]  ;;  %v3000_v42 = vor.u32 %v3490_v33, %v2997_v35  ;;  %v3345_v33 = vld [vmem:[#allocation6 + $0xf4] sm:$0xf0] }
  0x7c   :  { %1836 = vmatpush.bf16.msrb.mxu3 %v3304_v3  ;;  %v3253_v40 = vld [vmem:[#allocation6 + $0x790] sm:$0xf0]  ;;  %v3128_v43 = vor.u32 %v3522_v36, %v3125_v37  ;;  %v3454_v44 = vld [vmem:[#allocation6 + $0x464] sm:$0xf]  ;;  %v3377_v36 = vld [vmem:[#allocation6 + $0x1f4] sm:$0xf0] }
  0x7d   :  { %1798 = vmatpush.bf16.msrb.mxu0 %v2904_v9  ;;  %v2853_v45 = vld [vmem:[#allocation6 + $0x470] sm:$0xf0]  ;;  %v3486_v46 = vld [vmem:[#allocation6 + $0x564] sm:$0xf]  ;;  %v3256_v47 = vor.u32 %v3554_v39, %v3253_v40  ;;  %v2667_v37 = vld [vmem:[#allocation6 + $0x2e8] sm:$0xf] }
  0x7e   :  { %1811 = vmatpush.bf16.msrb.mxu1 %v3032_v10  ;;  %v2981_v48 = vld [vmem:[#allocation6 + $0x570] sm:$0xf0]  ;;  %v3518_v49 = vld [vmem:[#allocation6 + $0x664] sm:$0xf]  ;;  %v2856_v53 = vor.u32 %v3454_v44, %v2853_v45  ;;  %v3409_v39 = vld [vmem:[#allocation6 + $0x2f4] sm:$0xf0]  ;;  %v2412_v45 = vor.u32 %v3345_v33, %v2411_v30 }
  0x7f   :  { %1824 = vmatpush.bf16.msrb.mxu2 %v3160_v11  ;;  %v3109_v50 = vld [vmem:[#allocation6 + $0x670] sm:$0xf0]  ;;  %v3550_v51 = vld [vmem:[#allocation6 + $0x764] sm:$0xf]  ;;  %v2984_v54 = vor.u32 %v3486_v46, %v2981_v48  ;;  %v2395_v48 = vld [vmem:[#allocation6 + $0xc8] sm:$0xf] }
  0x80   :  { %1837 = vmatpush.bf16.msrb.mxu3 %v3288_v15  ;;  %v3237_v52 = vld [vmem:[#allocation6 + $0x770] sm:$0xf0]  ;;  %v3112_v55 = vor.u32 %v3518_v49, %v3109_v50  ;;  %v3450_v56 = vld [vmem:[#allocation6 + $0x444] sm:$0xf]  ;;  %v3341_v49 = vld [vmem:[#allocation6 + $0xd4] sm:$0xf0] }
  0x81   :  { %1799 = vmatpush.bf16.msrb.mxu0 %v2888_v24  ;;  %v2837_v57 = vld [vmem:[#allocation6 + $0x450] sm:$0xf0]  ;;  %v3482_v58 = vld [vmem:[#allocation6 + $0x544] sm:$0xf]  ;;  %v3240_v59 = vor.u32 %v3550_v51, %v3237_v52  ;;  %v2523_v50 = vld [vmem:[#allocation6 + $0x1c8] sm:$0xf] }
  0x82   :  { %1812 = vmatpush.bf16.msrb.mxu1 %v3016_v25  ;;  %v2965_v60 = vld [vmem:[#allocation6 + $0x550] sm:$0xf0]  ;;  %v3514_v61 = vld [vmem:[#allocation6 + $0x644] sm:$0xf]  ;;  %v2840_v1 = vor.u32 %v3450_v56, %v2837_v57  ;;  %v3373_v52 = vld [vmem:[#allocation6 + $0x1d4] sm:$0xf0]  ;;  %v2396_v57 = vor.u32 %v3341_v49, %v2395_v48 }
  0x83   :  { %1825 = vmatpush.bf16.msrb.mxu2 %v3144_v27  ;;  %v3093_v62 = vld [vmem:[#allocation6 + $0x650] sm:$0xf0]  ;;  %v3546_v63 = vld [vmem:[#allocation6 + $0x744] sm:$0xf]  ;;  %v2968_v2 = vor.u32 %v3482_v58, %v2965_v60  ;;  %v3437_v56 = vld [vmem:[#allocation6 + $0x3d4] sm:$0xf0]  ;;  %v2524_v58 = vor.u32 %v3373_v52, %v2523_v50 }
  0x84   :  { %1838 = vmatpush.bf16.msrb.mxu3 %v3272_v34  ;;  %v3221_v0 = vld [vmem:[#allocation6 + $0x750] sm:$0xf0]  ;;  %v3096_v3 = vor.u32 %v3514_v61, %v3093_v62  ;;  %v3446_v4 = vld [vmem:[#allocation6 + $0x424] sm:$0xf]  ;;  %v2539_v34 = vld [vmem:[#allocation6 + $0x1e8] sm:$0xf] }
  0x85   :  { %1800 = vmatpush.bf16.msrb.mxu0 %v2872_v41  ;;  %v2821_v5 = vld [vmem:[#allocation6 + $0x430] sm:$0xf0]  ;;  %v3478_v6 = vld [vmem:[#allocation6 + $0x524] sm:$0xf]  ;;  %v3224_v7 = vor.u32 %v3546_v63, %v3221_v0  ;;  %v2540_v46 = vor.u32 %v3377_v36, %v2539_v34  ;;  %v2379_v60 = vld [vmem:[#allocation6 + $0xa8] sm:$0xf] }
  0x86   :  { %1813 = vmatpush.bf16.msrb.mxu1 %v3000_v42  ;;  %v2949_v8 = vld [vmem:[#allocation6 + $0x530] sm:$0xf0]  ;;  %v3510_v9 = vld [vmem:[#allocation6 + $0x624] sm:$0xf]  ;;  %v2824_v13 = vor.u32 %v3446_v4, %v2821_v5  ;;  %v2795_v42 = vld [vmem:[#allocation6 + $0x3e8] sm:$0xf] }
  0x87   :  { %1826 = vmatpush.bf16.msrb.mxu2 %v3128_v43  ;;  %v3077_v10 = vld [vmem:[#allocation6 + $0x630] sm:$0xf0]  ;;  %v3542_v11 = vld [vmem:[#allocation6 + $0x724] sm:$0xf]  ;;  %v2952_v16 = vor.u32 %v3478_v6, %v2949_v8  ;;  %v3441_v43 = vld [vmem:[#allocation6 + $0x3f4] sm:$0xf0] }
  0x88   :  { %1839 = vmatpush.bf16.msrb.mxu3 %v3256_v47  ;;  %v3205_v12 = vld [vmem:[#allocation6 + $0x730] sm:$0xf0]  ;;  %v3442_v14 = vld [vmem:[#allocation6 + $0x404] sm:$0xf]  ;;  %v3080_v17 = vor.u32 %v3510_v9, %v3077_v10  ;;  %v2668_v47 = vor.u32 %v3409_v39, %v2667_v37  ;;  %v2796_v51 = vor.u32 %v3441_v43, %v2795_v42  ;;  %v3337_v61 = vld [vmem:[#allocation6 + $0xb4] sm:$0xf0] }
  0x89   :  { %1801 = vmatpush.bf16.msrb.mxu0 %v2856_v53  ;;  %v2805_v15 = vld [vmem:[#allocation6 + $0x410] sm:$0xf0]  ;;  %v3474_v18 = vld [vmem:[#allocation6 + $0x504] sm:$0xf]  ;;  %v3208_v24 = vor.u32 %v3542_v11, %v3205_v12  ;;  %v2651_v53 = vld [vmem:[#allocation6 + $0x2c8] sm:$0xf]  ;;  %v2380_v5 = vor.u32 %v3337_v61, %v2379_v60 }
  0x8a   :  { %1814 = vmatpush.bf16.msrb.mxu1 %v2984_v54  ;;  %v2933_v19 = vld [vmem:[#allocation6 + $0x510] sm:$0xf0]  ;;  %v3506_v23 = vld [vmem:[#allocation6 + $0x604] sm:$0xf]  ;;  %v2808_v35 = vor.u32 %v3442_v14, %v2805_v15  ;;  %v3405_v54 = vld [vmem:[#allocation6 + $0x2d4] sm:$0xf0] }
  0x8b   :  { %1827 = vmatpush.bf16.msrb.mxu2 %v3112_v55  ;;  %v3061_v25 = vld [vmem:[#allocation6 + $0x610] sm:$0xf0]  ;;  %v3538_v27 = vld [vmem:[#allocation6 + $0x704] sm:$0xf]  ;;  %v2936_v40 = vor.u32 %v3474_v18, %v2933_v19  ;;  %v2779_v55 = vld [vmem:[#allocation6 + $0x3c8] sm:$0xf] }
  0x8c   :  { %1840 = vmatpush.bf16.msrb.mxu3 %v3240_v59  ;;  %v3189_v28 = vld [vmem:[#allocation6 + $0x710] sm:$0xf0]  ;;  %v3064_v41 = vor.u32 %v3506_v23, %v3061_v25  ;;  %v2652_v59 = vor.u32 %v3405_v54, %v2651_v53  ;;  %v2507_v62 = vld [vmem:[#allocation6 + $0x1a8] sm:$0xf]  ;;  %v2780_v63 = vor.u32 %v3437_v56, %v2779_v55  ;;  %v3369_v0 = vld [vmem:[#allocation6 + $0x1b4] sm:$0xf0] }
  0x8d   :  { %1802 = vmatpush.bf16.msrb.mxu0 %v2840_v1  ;;  %v3192_v44 = vor.u32 %v3538_v27, %v3189_v28  ;;  %v2635_v1 = vld [vmem:[#allocation6 + $0x2a8] sm:$0xf]  ;;  %v3433_v4 = vld [vmem:[#allocation6 + $0x3b4] sm:$0xf0]  ;;  %v2508_v6 = vor.u32 %v3369_v0, %v2507_v62 }
  0x8e   :  { %1815 = vmatpush.bf16.msrb.mxu1 %v2968_v2  ;;  %v3401_v2 = vld [vmem:[#allocation6 + $0x2b4] sm:$0xf0]  ;;  %v2363_v8 = vld [vmem:[#allocation6 + $0x88] sm:$0xf] }
  0x8f   :  { %1828 = vmatpush.bf16.msrb.mxu2 %v3096_v3  ;;  %v2763_v3 = vld [vmem:[#allocation6 + $0x3a8] sm:$0xf]  ;;  %v3365_v11 = vld [vmem:[#allocation6 + $0x194] sm:$0xf0] }
  0x90   :  { %1841 = vmatpush.bf16.msrb.mxu3 %v3224_v7  ;;  %v2636_v7 = vor.u32 %v3401_v2, %v2635_v1  ;;  %v2491_v9 = vld [vmem:[#allocation6 + $0x188] sm:$0xf]  ;;  %v2764_v10 = vor.u32 %v3433_v4, %v2763_v3  ;;  %v3361_v23 = vld [vmem:[#allocation6 + $0x174] sm:$0xf0] }
  0x91   :  { %1803 = vmatpush.bf16.msrb.mxu0 %v2824_v13  ;;  %v2619_v12 = vld [vmem:[#allocation6 + $0x288] sm:$0xf]  ;;  %v3393_v25 = vld [vmem:[#allocation6 + $0x274] sm:$0xf0] }
  0x92   :  { %1816 = vmatpush.bf16.msrb.mxu1 %v2952_v16  ;;  %v2747_v13 = vld [vmem:[#allocation6 + $0x388] sm:$0xf]  ;;  %v3425_v28 = vld [vmem:[#allocation6 + $0x374] sm:$0xf0] }
  0x93   :  { %1829 = vmatpush.bf16.msrb.mxu2 %v3080_v17  ;;  %v2347_v16 = vld [vmem:[#allocation6 + $0x68] sm:$0xf]  ;;  %v3329_v17 = vld [vmem:[#allocation6 + $0x74] sm:$0xf0] }
  0x94   :  { %1842 = vmatpush.bf16.msrb.mxu3 %v3208_v24  ;;  %v2475_v18 = vld [vmem:[#allocation6 + $0x168] sm:$0xf]  ;;  %v2348_v30 = vor.u32 %v3329_v17, %v2347_v16  ;;  %v3325_v36 = vld [vmem:[#allocation6 + $0x54] sm:$0xf0] }
  0x95   :  { %1804 = vmatpush.bf16.msrb.mxu0 %v2808_v35  ;;  %v2603_v24 = vld [vmem:[#allocation6 + $0x268] sm:$0xf]  ;;  %v2476_v33 = vor.u32 %v3361_v23, %v2475_v18  ;;  %v3389_v42 = vld [vmem:[#allocation6 + $0x254] sm:$0xf0] }
  0x96   :  { %1817 = vmatpush.bf16.msrb.mxu1 %v2936_v40  ;;  %v2731_v27 = vld [vmem:[#allocation6 + $0x368] sm:$0xf]  ;;  %v2604_v34 = vor.u32 %v3393_v25, %v2603_v24  ;;  %v3357_v40 = vld [vmem:[#allocation6 + $0x154] sm:$0xf0] }
  0x97   :  { %1830 = vmatpush.bf16.msrb.mxu2 %v3064_v41  ;;  %v2331_v35 = vld [vmem:[#allocation6 + $0x48] sm:$0xf]  ;;  %v2732_v39 = vor.u32 %v3425_v28, %v2731_v27  ;;  %v3321_v49 = vld [vmem:[#allocation6 + $0x34] sm:$0xf0] }
  0x98   :  { %1843 = vmatpush.bf16.msrb.mxu3 %v3192_v44  ;;  %1805 = vmatmul.bf16.vlgmr.msrb.gmra.mxu0 %v3785_v31  ;;  %v3397_v31 = vld [vmem:[#allocation6 + $0x294] sm:$0xf0]  ;;  %v2459_v37 = vld [vmem:[#allocation6 + $0x148] sm:$0xf] }
  0x99   :  { %1849 = vmatpush.bf16.msra.mxu0 %v2412_v45  ;;  %1818 = vmatmul.bf16.vlgmr.msrb.gmra.mxu1 %v3789_v38  ;;  %v2492_v38 = vor.u32 %v3365_v11, %v2491_v9  ;;  %v2620_v15 = vor.u32 %v3397_v31, %v2619_v12  ;;  %v2587_v41 = vld [vmem:[#allocation6 + $0x248] sm:$0xf]  ;;  %v3421_v44 = vld [vmem:[#allocation6 + $0x354] sm:$0xf0]  ;;  %v2332_v45 = vor.u32 %v3325_v36, %v2331_v35 }
  0x9a   :  { %1862 = vmatpush.bf16.msra.mxu1 %v2540_v46  ;;  %1831 = vmatmul.bf16.vlgmr.msrb.gmra.mxu2 %v3783_v29  ;;  %v3333_v29 = vld [vmem:[#allocation6 + $0x94] sm:$0xf0]  ;;  %v2715_v43 = vld [vmem:[#allocation6 + $0x348] sm:$0xf]  ;;  %v2460_v46 = vor.u32 %v3357_v40, %v2459_v37 }
  0x9b   :  { %1875 = vmatpush.bf16.msra.mxu2 %v2668_v47  ;;  %1844 = vmatmul.bf16.vlgmr.msrb.gmra.mxu3 %v3787_v32  ;;  %v3429_v32 = vld [vmem:[#allocation6 + $0x394] sm:$0xf0]  ;;  %v2364_v14 = vor.u32 %v3333_v29, %v2363_v8  ;;  %v2588_v47 = vor.u32 %v3389_v42, %v2587_v41  ;;  %v2315_v48 = vld [vmem:[#allocation6 + $0x28] sm:$0xf] }
  0x9c   :  { %1888 = vmatpush.bf16.msra.mxu3 %v2796_v51  ;;  %v2748_v19 = vor.u32 %v3429_v32, %v2747_v13  ;;  %v2443_v50 = vld [vmem:[#allocation6 + $0x128] sm:$0xf]  ;;  %v2716_v51 = vor.u32 %v3421_v44, %v2715_v43  ;;  %v3353_v52 = vld [vmem:[#allocation6 + $0x134] sm:$0xf0] }
  0x9d   :  { %1850 = vmatpush.bf16.msra.mxu0 %v2396_v57  ;;  %v2571_v53 = vld [vmem:[#allocation6 + $0x228] sm:$0xf]  ;;  %v3385_v54 = vld [vmem:[#allocation6 + $0x234] sm:$0xf0]  ;;  %v2316_v57 = vor.u32 %v3321_v49, %v2315_v48  ;;  %v2444_v60 = vor.u32 %v3353_v52, %v2443_v50 }
  0x9e   :  { %1863 = vmatpush.bf16.msra.mxu1 %v2524_v58  ;;  %v2699_v55 = vld [vmem:[#allocation6 + $0x328] sm:$0xf]  ;;  %v3417_v56 = vld [vmem:[#allocation6 + $0x334] sm:$0xf0]  ;;  %v2572_v61 = vor.u32 %v3385_v54, %v2571_v53 }
  0x9f   :  { %1876 = vmatpush.bf16.msra.mxu2 %v2652_v59  ;;  %v2299_v58 = vld [vmem:[#allocation6 + $0x8] sm:$0xf]  ;;  %v3317_v59 = vld [vmem:[#allocation6 + $0x14] sm:$0xf0]  ;;  %v2700_v1 = vor.u32 %v3417_v56, %v2699_v55 }
  0xa0   :  { %1889 = vmatpush.bf16.msra.mxu3 %v2780_v63  ;;  %v2427_v62 = vld [vmem:[#allocation6 + $0x108] sm:$0xf]  ;;  %v3349_v63 = vld [vmem:[#allocation6 + $0x114] sm:$0xf0]  ;;  %v2300_v8 = vor.u32 %v3317_v59, %v2299_v58 }
  0xa1   :  { %1851 = vmatpush.bf16.msra.mxu0 %v2380_v5  ;;  %v2555_v0 = vld [vmem:[#allocation6 + $0x208] sm:$0xf]  ;;  %v3381_v2 = vld [vmem:[#allocation6 + $0x214] sm:$0xf0]  ;;  %v2428_v11 = vor.u32 %v3349_v63, %v2427_v62 }
  0xa2   :  { %1864 = vmatpush.bf16.msra.mxu1 %v2508_v6  ;;  %v2683_v3 = vld [vmem:[#allocation6 + $0x308] sm:$0xf]  ;;  %v3413_v4 = vld [vmem:[#allocation6 + $0x314] sm:$0xf0]  ;;  %v2556_v12 = vor.u32 %v3381_v2, %v2555_v0 }
  0xa3   :  { %1877 = vmatpush.bf16.msra.mxu2 %v2636_v7  ;;  %v2923_v5 = vld [vmem:[#allocation6 + $0x4e8] sm:$0xf]  ;;  %v3473_v6 = vld [vmem:[#allocation6 + $0x4f4] sm:$0xf0]  ;;  %v2684_v32 = vor.u32 %v3413_v4, %v2683_v3 }
  0xa4   :  { %1890 = vmatpush.bf16.msra.mxu3 %v2764_v10  ;;  %v3051_v7 = vld [vmem:[#allocation6 + $0x5e8] sm:$0xf]  ;;  %v3505_v29 = vld [vmem:[#allocation6 + $0x5f4] sm:$0xf0] }
  0xa5   :  { %1852 = vmatpush.bf16.msra.mxu0 %v2364_v14  ;;  %v3179_v9 = vld [vmem:[#allocation6 + $0x6e8] sm:$0xf]  ;;  %v3537_v10 = vld [vmem:[#allocation6 + $0x6f4] sm:$0xf0]  ;;  %v2924_v14 = vor.u32 %v3473_v6, %v2923_v5 }
  0xa6   :  { %1865 = vmatpush.bf16.msra.mxu1 %v2492_v38  ;;  %v3307_v31 = vld [vmem:[#allocation6 + $0x7e8] sm:$0xf]  ;;  %v3569_v13 = vld [vmem:[#allocation6 + $0x7f4] sm:$0xf0]  ;;  %v3052_v38 = vor.u32 %v3505_v29, %v3051_v7 }
  0xa7   :  { %1878 = vmatpush.bf16.msra.mxu2 %v2620_v15  ;;  %v3180_v15 = vor.u32 %v3537_v10, %v3179_v9  ;;  %v2907_v16 = vld [vmem:[#allocation6 + $0x4c8] sm:$0xf]  ;;  %v3469_v17 = vld [vmem:[#allocation6 + $0x4d4] sm:$0xf0] }
  0xa8   :  { %1891 = vmatpush.bf16.msra.mxu3 %v2748_v19  ;;  %v3035_v18 = vld [vmem:[#allocation6 + $0x5c8] sm:$0xf]  ;;  %v3308_v19 = vor.u32 %v3569_v13, %v3307_v31  ;;  %v3501_v23 = vld [vmem:[#allocation6 + $0x5d4] sm:$0xf0] }
  0xa9   :  { %1853 = vmatpush.bf16.msra.mxu0 %v2348_v30  ;;  %v3163_v24 = vld [vmem:[#allocation6 + $0x6c8] sm:$0xf]  ;;  %v3533_v25 = vld [vmem:[#allocation6 + $0x6d4] sm:$0xf0]  ;;  %v2908_v30 = vor.u32 %v3469_v17, %v2907_v16 }
  0xaa   :  { %1866 = vmatpush.bf16.msra.mxu1 %v2476_v33  ;;  %v3291_v27 = vld [vmem:[#allocation6 + $0x7c8] sm:$0xf]  ;;  %v3565_v28 = vld [vmem:[#allocation6 + $0x7d4] sm:$0xf0]  ;;  %v3036_v33 = vor.u32 %v3501_v23, %v3035_v18 }
  0xab   :  { %1879 = vmatpush.bf16.msra.mxu2 %v2604_v34  ;;  %v3164_v34 = vor.u32 %v3533_v25, %v3163_v24  ;;  %v2891_v35 = vld [vmem:[#allocation6 + $0x4a8] sm:$0xf]  ;;  %v3465_v36 = vld [vmem:[#allocation6 + $0x4b4] sm:$0xf0] }
  0xac   :  { %1892 = vmatpush.bf16.msra.mxu3 %v2732_v39  ;;  %v3019_v37 = vld [vmem:[#allocation6 + $0x5a8] sm:$0xf]  ;;  %v3292_v39 = vor.u32 %v3565_v28, %v3291_v27  ;;  %v3497_v40 = vld [vmem:[#allocation6 + $0x5b4] sm:$0xf0] }
  0xad   :  { %1854 = vmatpush.bf16.msra.mxu0 %v2332_v45  ;;  %v3147_v41 = vld [vmem:[#allocation6 + $0x6a8] sm:$0xf]  ;;  %v3529_v42 = vld [vmem:[#allocation6 + $0x6b4] sm:$0xf0]  ;;  %v2892_v45 = vor.u32 %v3465_v36, %v2891_v35 }
  0xae   :  { %1867 = vmatpush.bf16.msra.mxu1 %v2460_v46  ;;  %v3275_v43 = vld [vmem:[#allocation6 + $0x7a8] sm:$0xf]  ;;  %v3561_v44 = vld [vmem:[#allocation6 + $0x7b4] sm:$0xf0]  ;;  %v3020_v46 = vor.u32 %v3497_v40, %v3019_v37 }
  0xaf   :  { %1880 = vmatpush.bf16.msra.mxu2 %v2588_v47  ;;  %v3148_v47 = vor.u32 %v3529_v42, %v3147_v41  ;;  %v2875_v48 = vld [vmem:[#allocation6 + $0x488] sm:$0xf]  ;;  %v3461_v49 = vld [vmem:[#allocation6 + $0x494] sm:$0xf0] }
  0xb0   :  { %1893 = vmatpush.bf16.msra.mxu3 %v2716_v51  ;;  %v3003_v50 = vld [vmem:[#allocation6 + $0x588] sm:$0xf]  ;;  %v3276_v51 = vor.u32 %v3561_v44, %v3275_v43  ;;  %v3525_v53 = vld [vmem:[#allocation6 + $0x694] sm:$0xf0] }
  0xb1   :  { %1855 = vmatpush.bf16.msra.mxu0 %v2316_v57  ;;  %v3131_v52 = vld [vmem:[#allocation6 + $0x688] sm:$0xf]  ;;  %v3457_v57 = vld [vmem:[#allocation6 + $0x474] sm:$0xf0] }
  0xb2   :  { %1868 = vmatpush.bf16.msra.mxu1 %v2444_v60  ;;  %v3259_v54 = vld [vmem:[#allocation6 + $0x788] sm:$0xf]  ;;  %v3489_v60 = vld [vmem:[#allocation6 + $0x574] sm:$0xf0] }
  0xb3   :  { %1881 = vmatpush.bf16.msra.mxu2 %v2572_v61  ;;  %v2859_v56 = vld [vmem:[#allocation6 + $0x468] sm:$0xf]  ;;  %v3521_v62 = vld [vmem:[#allocation6 + $0x674] sm:$0xf0] }
  0xb4   :  { %1894 = vmatpush.bf16.msra.mxu3 %v2700_v1  ;;  %v2987_v58 = vld [vmem:[#allocation6 + $0x568] sm:$0xf]  ;;  %v3553_v0 = vld [vmem:[#allocation6 + $0x774] sm:$0xf0]  ;;  %v2860_v1 = vor.u32 %v3457_v57, %v2859_v56 }
  0xb5   :  { %1856 = vmatpush.bf16.msra.mxu0 %v2300_v8  ;;  %v3115_v61 = vld [vmem:[#allocation6 + $0x668] sm:$0xf]  ;;  %v2988_v2 = vor.u32 %v3489_v60, %v2987_v58  ;;  %v3453_v5 = vld [vmem:[#allocation6 + $0x454] sm:$0xf0] }
  0xb6   :  { %1869 = vmatpush.bf16.msra.mxu1 %v2428_v11  ;;  %v3243_v63 = vld [vmem:[#allocation6 + $0x768] sm:$0xf]  ;;  %v3116_v3 = vor.u32 %v3521_v62, %v3115_v61  ;;  %v3485_v8 = vld [vmem:[#allocation6 + $0x554] sm:$0xf0]  ;;  %v3339_v61 = vld [vmem:[#allocation6 + $0xcc] sm:$0xf] }
  0xb7   :  { %1882 = vmatpush.bf16.msra.mxu2 %v2556_v12  ;;  %v2843_v4 = vld [vmem:[#allocation6 + $0x448] sm:$0xf]  ;;  %v3244_v7 = vor.u32 %v3553_v0, %v3243_v63  ;;  %v3517_v9 = vld [vmem:[#allocation6 + $0x654] sm:$0xf0]  ;;  %v2397_v62 = vld [vmem:[#allocation6 + $0xd8] sm:$0xf0] }
  0xb8   :  { %1895 = vmatpush.bf16.msra.mxu3 %v2684_v32  ;;  %1857 = vmatmul.bf16.vlgmr.msra.gmra.mxu0 %v3773_v21  ;;  %v3557_v21 = vld [vmem:[#allocation6 + $0x794] sm:$0xf0]  ;;  %v2971_v6 = vld [vmem:[#allocation6 + $0x548] sm:$0xf]  ;;  %v2844_v12 = vor.u32 %v3453_v5, %v2843_v4  ;;  %v3371_v63 = vld [vmem:[#allocation6 + $0x1cc] sm:$0xf] }
  0xb9   :  { %1901 = vmatpush.bf16.msrb.mxu0 %v2924_v14  ;;  %1870 = vmatmul.bf16.vlgmr.msra.gmra.mxu1 %v3778_v26  ;;  %v3132_v26 = vor.u32 %v3525_v53, %v3131_v52  ;;  %v3260_v59 = vor.u32 %v3557_v21, %v3259_v54  ;;  %v3099_v29 = vld [vmem:[#allocation6 + $0x648] sm:$0xf]  ;;  %v3549_v11 = vld [vmem:[#allocation6 + $0x754] sm:$0xf0]  ;;  %v2972_v13 = vor.u32 %v3485_v8, %v2971_v6  ;;  %v2669_v52 = vld [vmem:[#allocation6 + $0x2f8] sm:$0xf0] }
  0xba   :  { %1914 = vmatpush.bf16.msrb.mxu1 %v3052_v38  ;;  %1883 = vmatmul.bf16.vlgmr.msra.gmra.mxu2 %v3771_v20  ;;  %v3493_v20 = vld [vmem:[#allocation6 + $0x594] sm:$0xf0]  ;;  %v3227_v10 = vld [vmem:[#allocation6 + $0x748] sm:$0xf]  ;;  %v3100_v32 = vor.u32 %v3517_v9, %v3099_v29  ;;  %v3435_v4 = vld [vmem:[#allocation6 + $0x3cc] sm:$0xf] }
  0xbb   :  { %1927 = vmatpush.bf16.msrb.mxu2 %v3180_v15  ;;  %1896 = vmatmul.bf16.vlgmr.msra.gmra.mxu3 %v3775_v22  ;;  %v2876_v22 = vor.u32 %v3461_v49, %v2875_v48  ;;  %v3004_v55 = vor.u32 %v3493_v20, %v3003_v50  ;;  %v2827_v14 = vld [vmem:[#allocation6 + $0x428] sm:$0xf]  ;;  %v3449_v38 = vld [vmem:[#allocation6 + $0x434] sm:$0xf0]  ;;  %v3228_v17 = vor.u32 %v3549_v11, %v3227_v10  ;;  %v2413_v48 = vld [vmem:[#allocation6 + $0xf8] sm:$0xf0] }
  0xbc   :  { %1940 = vmatpush.bf16.msrb.mxu3 %v3308_v19  ;;  %v2955_v15 = vld [vmem:[#allocation6 + $0x528] sm:$0xf]  ;;  %v3481_v18 = vld [vmem:[#allocation6 + $0x534] sm:$0xf0]  ;;  %v2828_v28 = vor.u32 %v3449_v38, %v2827_v14  ;;  %v3375_v49 = vld [vmem:[#allocation6 + $0x1ec] sm:$0xf] }
  0xbd   :  { %1902 = vmatpush.bf16.msrb.mxu0 %v2908_v30  ;;  %v3083_v19 = vld [vmem:[#allocation6 + $0x628] sm:$0xf]  ;;  %v3513_v23 = vld [vmem:[#allocation6 + $0x634] sm:$0xf0]  ;;  %v3407_v20 = vld [vmem:[#allocation6 + $0x2ec] sm:$0xf] }
  0xbe   :  { %1915 = vmatpush.bf16.msrb.mxu1 %v3036_v33  ;;  %v3211_v25 = vld [vmem:[#allocation6 + $0x728] sm:$0xf]  ;;  %v3545_v27 = vld [vmem:[#allocation6 + $0x734] sm:$0xf0]  ;;  %v3084_v35 = vor.u32 %v3513_v23, %v3083_v19  ;;  %v2672_v60 = vor.u32 %v3407_v20, %v2669_v52  ;;  %v2781_v5 = vld [vmem:[#allocation6 + $0x3d8] sm:$0xf0] }
  0xbf   :  { %1928 = vmatpush.bf16.msrb.mxu2 %v3164_v34  ;;  %v2811_v30 = vld [vmem:[#allocation6 + $0x408] sm:$0xf]  ;;  %v3445_v33 = vld [vmem:[#allocation6 + $0x414] sm:$0xf0]  ;;  %v2956_v34 = vor.u32 %v3481_v18, %v2955_v15  ;;  %v3212_v41 = vor.u32 %v3545_v27, %v3211_v25  ;;  %v3335_v10 = vld [vmem:[#allocation6 + $0xac] sm:$0xf] }
  0xc0   :  { %1941 = vmatpush.bf16.msrb.mxu3 %v3292_v39  ;;  %v2939_v36 = vld [vmem:[#allocation6 + $0x508] sm:$0xf]  ;;  %v3477_v37 = vld [vmem:[#allocation6 + $0x514] sm:$0xf0]  ;;  %v2812_v50 = vor.u32 %v3445_v33, %v2811_v30  ;;  %v2381_v11 = vld [vmem:[#allocation6 + $0xb8] sm:$0xf0] }
  0xc1   :  { %1903 = vmatpush.bf16.msrb.mxu0 %v2892_v45  ;;  %v3067_v39 = vld [vmem:[#allocation6 + $0x608] sm:$0xf]  ;;  %v3509_v42 = vld [vmem:[#allocation6 + $0x614] sm:$0xf0]  ;;  %v2940_v21 = vor.u32 %v3477_v37, %v2939_v36  ;;  %v3399_v14 = vld [vmem:[#allocation6 + $0x2ac] sm:$0xf]  ;;  %v2384_v19 = vor.u32 %v3335_v10, %v2381_v11 }
  0xc2   :  { %1916 = vmatpush.bf16.msrb.mxu1 %v3020_v46  ;;  %v3195_v43 = vld [vmem:[#allocation6 + $0x708] sm:$0xf]  ;;  %v3541_v44 = vld [vmem:[#allocation6 + $0x714] sm:$0xf0]  ;;  %v2637_v38 = vld [vmem:[#allocation6 + $0x2b8] sm:$0xf0] }
  0xc3   :  { %1929 = vmatpush.bf16.msrb.mxu2 %v3148_v47  ;;  %v3343_v47 = vld [vmem:[#allocation6 + $0xec] sm:$0xf]  ;;  %v3196_v57 = vor.u32 %v3541_v44, %v3195_v43  ;;  %v3812_v15 = vld [vmem:[#allocation1 + $0x24] sm:$0xff]  ;;  %v2765_v18 = vld [vmem:[#allocation6 + $0x3b8] sm:$0xf0]  ;;  %v2640_v25 = vor.u32 %v3399_v14, %v2637_v38 }
  0xc4   :  { %1942 = vmatpush.bf16.msrb.mxu3 %v3276_v51  ;;  %v1650_v31 = vpop.f32.mrf.mxu0  ;;  %v2541_v51 = vld [vmem:[#allocation6 + $0x1f8] sm:$0xf0]  ;;  %v2416_v58 = vor.u32 %v3343_v47, %v2413_v48  ;;  %v3331_v27 = vld [vmem:[#allocation6 + $0x8c] sm:$0xf] }
  0xc5   :  { %1904 = vmatpush.bf16.msrb.mxu0 %v2876_v22  ;;  %v1663_v16 = vpop.f32.mrf.mxu1  ;;  %v3068_v22 = vor.u32 %v3509_v42, %v3067_v39  ;;  %v3818_v23 = vld [vmem:[#allocation1 + $0x2d] sm:$0xff]  ;;  %v3363_v30 = vld [vmem:[#allocation6 + $0x18c] sm:$0xf] }
  0xc6   :  { %1917 = vmatpush.bf16.msrb.mxu1 %v3004_v55  ;;  %v1664_v24 = vadd.f32 %v1663_v16, %v1650_v31  ;;  %v3439_v55 = vld [vmem:[#allocation6 + $0x3ec] sm:$0xf]  ;;  %v2784_v31 = vor.u32 %v3435_v4, %v2781_v5  ;;  %v2621_v36 = vld [vmem:[#allocation6 + $0x298] sm:$0xf0] }
  0xc7   :  { %1930 = vmatpush.bf16.msrb.mxu2 %v3132_v26  ;;  %v2797_v26 = vld [vmem:[#allocation6 + $0x3f8] sm:$0xf0]  ;;  %v3815_v16 = vld [vmem:[#allocation1 + $0x3f] sm:$0xff] }
  0xc8   :  { %1943 = vmatpush.bf16.msrb.mxu3 %v3260_v59  ;;  %v2544_v59 = vor.u32 %v3375_v49, %v2541_v51  ;;  %v2800_v0 = vor.u32 %v3439_v55, %v2797_v26  ;;  %v3427_v37 = vld [vmem:[#allocation6 + $0x38c] sm:$0xf]  ;;  %v2749_v39 = vld [vmem:[#allocation6 + $0x398] sm:$0xf0] }
  0xc9   :  { %1905 = vmatpush.bf16.msrb.mxu0 %v2860_v1  ;;  %v2525_v1 = vld [vmem:[#allocation6 + $0x1d8] sm:$0xf0]  ;;  %v3327_v44 = vld [vmem:[#allocation6 + $0x6c] sm:$0xf]  ;;  %v2752_v49 = vor.u32 %v3427_v37, %v2749_v39 }
  0xca   :  { %1918 = vmatpush.bf16.msrb.mxu1 %v2988_v2  ;;  %v1676_v40 = vpop.f32.mrf.mxu2  ;;  %v3403_v2 = vld [vmem:[#allocation6 + $0x2cc] sm:$0xf]  ;;  %v2528_v29 = vor.u32 %v3371_v63, %v2525_v1  ;;  %v2605_v20 = vld [vmem:[#allocation6 + $0x278] sm:$0xf0] }
  0xcb   :  { %1931 = vmatpush.bf16.msrb.mxu2 %v3116_v3  ;;  %v1677_v45 = vadd.f32 %v1676_v40, %v1664_v24  ;;  %v1689_v46 = vpop.f32.mrf.mxu3  ;;  %v2653_v3 = vld [vmem:[#allocation6 + $0x2d8] sm:$0xf0]  ;;  %v3391_v51 = vld [vmem:[#allocation6 + $0x26c] sm:$0xf] }
  0xcc   :  { %1944 = vmatpush.bf16.msrb.mxu3 %v3244_v7  ;;  %v1652_v54 = vpop.f32.mrf.mxu0  ;;  %v2400_v7 = vor.u32 %v3339_v61, %v2397_v62  ;;  %v2656_v9 = vor.u32 %v3403_v2, %v2653_v3  ;;  %v3423_v52 = vld [vmem:[#allocation6 + $0x36c] sm:$0xf]  ;;  %v2608_v26 = vor.u32 %v3391_v51, %v2605_v20  ;;  %v2589_v62 = vld [vmem:[#allocation6 + $0x258] sm:$0xf0] }
  0xcd   :  { %1906 = vmatpush.bf16.msrb.mxu0 %v2844_v12  ;;  %v3807_v53 = vadd.f32 %v1689_v46, %v1677_v45  ;;  %v1665_v56 = vpop.f32.mrf.mxu1  ;;  %v3367_v12 = vld [vmem:[#allocation6 + $0x1ac] sm:$0xf]  ;;  %v2349_v45 = vld [vmem:[#allocation6 + $0x78] sm:$0xf0] }
  0xce   :  { %1919 = vmatpush.bf16.msrb.mxu1 %v2972_v13  ;;  %v3809_v13 = vld [vmem:[#allocation1 + $0x36] sm:$0xff]  ;;  %v2733_v54 = vld [vmem:[#allocation6 + $0x378] sm:$0xf0] }
  0xcf   :  { %1932 = vmatpush.bf16.msrb.mxu2 %v3100_v32  ;;  %v2509_v32 = vld [vmem:[#allocation6 + $0x1b8] sm:$0xf0]  ;;  %v3359_v46 = vld [vmem:[#allocation6 + $0x16c] sm:$0xf] }
  0xd0   :  { %1945 = vmatpush.bf16.msrb.mxu3 %v3228_v17  ;;  %v3431_v17 = vld [vmem:[#allocation6 + $0x3ac] sm:$0xf]  ;;  %v2512_v24 = vor.u32 %v3367_v12, %v2509_v32  ;;  %v2717_v2 = vld [vmem:[#allocation6 + $0x358] sm:$0xf0] }
  0xd1   :  { %1907 = vmatpush.bf16.msrb.mxu0 %v2828_v28  ;;  %v2365_v28 = vld [vmem:[#allocation6 + $0x98] sm:$0xf0]  ;;  %v2768_v33 = vor.u32 %v3431_v17, %v2765_v18  ;;  %v3323_v56 = vld [vmem:[#allocation6 + $0x4c] sm:$0xf] }
  0xd2   :  { %1920 = vmatpush.bf16.msrb.mxu1 %v2956_v34  ;;  %v1678_v6 = vpop.f32.mrf.mxu2  ;;  %v2493_v34 = vld [vmem:[#allocation6 + $0x198] sm:$0xf0]  ;;  %v2368_v40 = vor.u32 %v3331_v27, %v2365_v28  ;;  %v3387_v61 = vld [vmem:[#allocation6 + $0x24c] sm:$0xf] }
  0xd3   :  { %1933 = vmatpush.bf16.msrb.mxu2 %v3084_v35  ;;  %v1691_v8 = vpop.f32.mrf.mxu3  ;;  %v3395_v35 = vld [vmem:[#allocation6 + $0x28c] sm:$0xf]  ;;  %v2496_v42 = vor.u32 %v3363_v30, %v2493_v34  ;;  %v2445_v12 = vld [vmem:[#allocation6 + $0x138] sm:$0xf0] }
  0xd4   :  { %1946 = vmatpush.bf16.msrb.mxu3 %v3212_v41  ;;  %v2624_v43 = vor.u32 %v3395_v35, %v2621_v36  ;;  %v3419_v1 = vld [vmem:[#allocation6 + $0x34c] sm:$0xf]  ;;  %v2573_v32 = vld [vmem:[#allocation6 + $0x238] sm:$0xf0] }
  0xd5   :  { %1908 = vmatpush.bf16.msrb.mxu0 %v2812_v50  ;;  %v1702_v41 = vpop.f32.mrf.mxu0  ;;  %v2477_v50 = vld [vmem:[#allocation6 + $0x178] sm:$0xf0]  ;;  %v3319_v8 = vld [vmem:[#allocation6 + $0x2c] sm:$0xf]  ;;  %v2720_v11 = vor.u32 %v3419_v1, %v2717_v2 }
  0xd6   :  { %1921 = vmatpush.bf16.msrb.mxu1 %v2940_v21  ;;  %v1703_v47 = vadd.f32 %v1702_v41, %v3807_v53  ;;  %v1715_v48 = vpop.f32.mrf.mxu1  ;;  %v2480_v55 = vor.u32 %v3359_v46, %v2477_v50  ;;  %v2736_v53 = vor.u32 %v3423_v52, %v2733_v54  ;;  %v3415_v14 = vld [vmem:[#allocation6 + $0x32c] sm:$0xf]  ;;  %v2701_v38 = vld [vmem:[#allocation6 + $0x338] sm:$0xf0] }
  0xd7   :  { %1934 = vmatpush.bf16.msrb.mxu2 %v3068_v22  ;;  %v2352_v22 = vor.u32 %v3327_v44, %v2349_v45  ;;  %v3315_v18 = vld [vmem:[#allocation6 + $0xc] sm:$0xf]  ;;  %v2429_v28 = vld [vmem:[#allocation6 + $0x118] sm:$0xf0]  ;;  %v2704_v34 = vor.u32 %v3415_v14, %v2701_v38 }
  0xd8   :  { %1947 = vmatpush.bf16.msrb.mxu3 %v3196_v57  ;;  %1909 = vmatmul.bf16.vlgmr.msrb.gmra.mxu0 %v3812_v15  ;;  %v1716_v21 = vadd.f32 %v1715_v48, %v1703_v47  ;;  %v2333_v57 = vld [vmem:[#allocation6 + $0x58] sm:$0xf0]  ;;  %v3347_v27 = vld [vmem:[#allocation6 + $0x10c] sm:$0xf] }
  0xd9   :  { %1953 = vmatpush.bf16.msra.mxu0 %v2416_v58  ;;  %1922 = vmatmul.bf16.vlgmr.msrb.gmra.mxu1 %v3818_v23  ;;  %v3355_v58 = vld [vmem:[#allocation6 + $0x14c] sm:$0xf]  ;;  %v2336_v3 = vor.u32 %v3323_v56, %v2333_v57  ;;  %v2557_v35 = vld [vmem:[#allocation6 + $0x218] sm:$0xf0]  ;;  %v2432_v47 = vor.u32 %v3347_v27, %v2429_v28 }
  0xda   :  { %1966 = vmatpush.bf16.msra.mxu1 %v2544_v59  ;;  %1935 = vmatmul.bf16.vlgmr.msrb.gmra.mxu2 %v3809_v13  ;;  %v3379_v30 = vld [vmem:[#allocation6 + $0x20c] sm:$0xf]  ;;  %v2685_v37 = vld [vmem:[#allocation6 + $0x318] sm:$0xf0] }
  0xdb   :  { %1979 = vmatpush.bf16.msra.mxu2 %v2672_v60  ;;  %1948 = vmatmul.bf16.vlgmr.msrb.gmra.mxu3 %v3815_v16  ;;  %v2461_v60 = vld [vmem:[#allocation6 + $0x158] sm:$0xf0]  ;;  %v3411_v36 = vld [vmem:[#allocation6 + $0x30c] sm:$0xf]  ;;  %v2560_v48 = vor.u32 %v3379_v30, %v2557_v35 }
  0xdc   :  { %1992 = vmatpush.bf16.msra.mxu3 %v2800_v0  ;;  %v2464_v6 = vor.u32 %v3355_v58, %v2461_v60  ;;  %v2925_v41 = vld [vmem:[#allocation6 + $0x4f8] sm:$0xf0]  ;;  %v3535_v45 = vld [vmem:[#allocation6 + $0x6ec] sm:$0xf]  ;;  %v2688_v51 = vor.u32 %v3411_v36, %v2685_v37 }
  0xdd   :  { %1954 = vmatpush.bf16.msra.mxu0 %v2400_v7  ;;  %v1728_v59 = vpop.f32.mrf.mxu2  ;;  %v1704_v5 = vpop.f32.mrf.mxu0  ;;  %v2592_v7 = vor.u32 %v3387_v61, %v2589_v62  ;;  %v3053_v44 = vld [vmem:[#allocation6 + $0x5f8] sm:$0xf0]  ;;  %v3531_v57 = vld [vmem:[#allocation6 + $0x6cc] sm:$0xf] }
  0xde   :  { %1967 = vmatpush.bf16.msra.mxu1 %v2528_v29  ;;  %v1729_v63 = vadd.f32 %v1728_v59, %v1716_v21  ;;  %v1741_v0 = vpop.f32.mrf.mxu3  ;;  %v2317_v29 = vld [vmem:[#allocation6 + $0x38] sm:$0xf0]  ;;  %v1717_v10 = vpop.f32.mrf.mxu1  ;;  %v3467_v21 = vld [vmem:[#allocation6 + $0x4cc] sm:$0xf] }
  0xdf   :  { %1980 = vmatpush.bf16.msra.mxu2 %v2656_v9  ;;  %v3351_v9 = vld [vmem:[#allocation6 + $0x12c] sm:$0xf]  ;;  %v2320_v17 = vor.u32 %v3319_v8, %v2317_v29  ;;  %v3181_v46 = vld [vmem:[#allocation6 + $0x6f8] sm:$0xf0] }
  0xe0   :  { %1993 = vmatpush.bf16.msra.mxu3 %v2784_v31  ;;  %v3822_v4 = vadd.f32 %v1741_v0, %v1729_v63  ;;  %v3383_v31 = vld [vmem:[#allocation6 + $0x22c] sm:$0xf]  ;;  %v3309_v50 = vld [vmem:[#allocation6 + $0x7f8] sm:$0xf0]  ;;  %v3184_v54 = vor.u32 %v3535_v45, %v3181_v46 }
  0xe1   :  { %1955 = vmatpush.bf16.msra.mxu0 %v2384_v19  ;;  %v2301_v19 = vld [vmem:[#allocation6 + $0x18] sm:$0xf0]  ;;  %v3563_v59 = vld [vmem:[#allocation6 + $0x7cc] sm:$0xf] }
  0xe2   :  { %1968 = vmatpush.bf16.msra.mxu1 %v2512_v24  ;;  %v2448_v24 = vor.u32 %v3351_v9, %v2445_v12  ;;  %v3037_v56 = vld [vmem:[#allocation6 + $0x5d8] sm:$0xf0]  ;;  %v3463_v63 = vld [vmem:[#allocation6 + $0x4ac] sm:$0xf]  ;;  %v3589_v9 = vld [vmem:[#allocation1] sm:$0xff] }
  0xe3   :  { %1981 = vmatpush.bf16.msra.mxu2 %v2640_v25  ;;  %v2576_v25 = vor.u32 %v3383_v31, %v2573_v32  ;;  %v3165_v58 = vld [vmem:[#allocation6 + $0x6d8] sm:$0xf0]  ;;  %v3495_v1 = vld [vmem:[#allocation6 + $0x5ac] sm:$0xf] }
  0xe4   :  { %1994 = vmatpush.bf16.msra.mxu3 %v2768_v33  ;;  %v3168_v62 = vor.u32 %v3531_v57, %v3165_v58  ;;  %v2893_v0 = vld [vmem:[#allocation6 + $0x4b8] sm:$0xf0]  ;;  %v3559_v8 = vld [vmem:[#allocation6 + $0x7ac] sm:$0xf] }
  0xe5   :  { %1956 = vmatpush.bf16.msra.mxu0 %v2368_v40  ;;  %v1730_v33 = vpop.f32.mrf.mxu2  ;;  %v3471_v40 = vld [vmem:[#allocation6 + $0x4ec] sm:$0xf]  ;;  %v3021_v5 = vld [vmem:[#allocation6 + $0x5b8] sm:$0xf0] }
  0xe6   :  { %1969 = vmatpush.bf16.msra.mxu1 %v2496_v42  ;;  %v1743_v39 = vpop.f32.mrf.mxu3  ;;  %v3503_v42 = vld [vmem:[#allocation6 + $0x5ec] sm:$0xf]  ;;  %v2928_v20 = vor.u32 %v3471_v40, %v2925_v41  ;;  %v3277_v29 = vld [vmem:[#allocation6 + $0x7b8] sm:$0xf0]  ;;  %v3024_v31 = vor.u32 %v3495_v1, %v3021_v5 }
  0xe7   :  { %1982 = vmatpush.bf16.msra.mxu2 %v2624_v43  ;;  %v2304_v43 = vor.u32 %v3315_v18, %v2301_v19  ;;  %v3056_v52 = vor.u32 %v3503_v42, %v3053_v44  ;;  %v3590_v10 = vld [vmem:[#allocation1 + $0x1b] sm:$0xff]  ;;  %v3591_v12 = vld [vmem:[#allocation1 + $0x9] sm:$0xff]  ;;  %v3280_v18 = vor.u32 %v3559_v8, %v3277_v29 }
  0xe8   :  { %1995 = vmatpush.bf16.msra.mxu3 %v2752_v49  ;;  %v3567_v49 = vld [vmem:[#allocation6 + $0x7ec] sm:$0xf]  ;;  %v2877_v38 = vld [vmem:[#allocation6 + $0x498] sm:$0xf0] }
  0xe9   :  { %1957 = vmatpush.bf16.msra.mxu0 %v2352_v22  ;;  %v2909_v22 = vld [vmem:[#allocation6 + $0x4d8] sm:$0xf0]  ;;  %v3459_v14 = vld [vmem:[#allocation6 + $0x48c] sm:$0xf] }
  0xea   :  { %1970 = vmatpush.bf16.msra.mxu1 %v2480_v55  ;;  %v3499_v55 = vld [vmem:[#allocation6 + $0x5cc] sm:$0xf]  ;;  %v2912_v60 = vor.u32 %v3467_v21, %v2909_v22  ;;  %v3005_v19 = vld [vmem:[#allocation6 + $0x598] sm:$0xf0]  ;;  %v2880_v30 = vor.u32 %v3459_v14, %v2877_v38 }
  0xeb   :  { %1983 = vmatpush.bf16.msra.mxu2 %v2608_v26  ;;  %v3312_v26 = vor.u32 %v3567_v49, %v3309_v50  ;;  %v3040_v61 = vor.u32 %v3499_v55, %v3037_v56  ;;  %v3555_v27 = vld [vmem:[#allocation6 + $0x78c] sm:$0xf]  ;;  %v3261_v28 = vld [vmem:[#allocation6 + $0x798] sm:$0xf0] }
  0xec   :  { %1996 = vmatpush.bf16.msra.mxu3 %v2736_v53  ;;  %v3293_v53 = vld [vmem:[#allocation6 + $0x7d8] sm:$0xf0]  ;;  %v3455_v36 = vld [vmem:[#allocation6 + $0x46c] sm:$0xf]  ;;  %v3264_v41 = vor.u32 %v3555_v27, %v3261_v28 }
  0xed   :  { %1958 = vmatpush.bf16.msra.mxu0 %v2336_v3  ;;  %v3296_v2 = vor.u32 %v3563_v59, %v3293_v53  ;;  %v3588_v3 = vld [vmem:[#allocation1 + $0x12] sm:$0xff]  ;;  %v2861_v37 = vld [vmem:[#allocation6 + $0x478] sm:$0xf0]  ;;  %v3487_v39 = vld [vmem:[#allocation6 + $0x56c] sm:$0xf] }
  0xee   :  { %1971 = vmatpush.bf16.msra.mxu1 %v2464_v6  ;;  %v3527_v6 = vld [vmem:[#allocation6 + $0x6ac] sm:$0xf]  ;;  %v2989_v42 = vld [vmem:[#allocation6 + $0x578] sm:$0xf0] }
  0xef   :  { %1984 = vmatpush.bf16.msra.mxu2 %v2592_v7  ;;  %v3149_v7 = vld [vmem:[#allocation6 + $0x6b8] sm:$0xf0]  ;;  %v3551_v46 = vld [vmem:[#allocation6 + $0x76c] sm:$0xf]  ;;  %v2992_v49 = vor.u32 %v3487_v39, %v2989_v42 }
  0xf0   :  { %1997 = vmatpush.bf16.msra.mxu3 %v2720_v11  ;;  %v2896_v11 = vor.u32 %v3463_v63, %v2893_v0  ;;  %v3152_v32 = vor.u32 %v3527_v6, %v3149_v7  ;;  %v3117_v44 = vld [vmem:[#allocation6 + $0x678] sm:$0xf0]  ;;  %v3515_v55 = vld [vmem:[#allocation6 + $0x64c] sm:$0xf] }
  0xf1   :  { %1959 = vmatpush.bf16.msra.mxu0 %v2320_v17  ;;  %v3491_v17 = vld [vmem:[#allocation6 + $0x58c] sm:$0xf]  ;;  %v2973_v22 = vld [vmem:[#allocation6 + $0x558] sm:$0xf0] }
  0xf2   :  { %1972 = vmatpush.bf16.msra.mxu1 %v2448_v24  ;;  %v3523_v24 = vld [vmem:[#allocation6 + $0x68c] sm:$0xf]  ;;  %v3229_v59 = vld [vmem:[#allocation6 + $0x758] sm:$0xf0] }
  0xf3   :  { %1985 = vmatpush.bf16.msra.mxu2 %v2576_v25  ;;  %v3133_v25 = vld [vmem:[#allocation6 + $0x698] sm:$0xf0]  ;;  %v3547_v58 = vld [vmem:[#allocation6 + $0x74c] sm:$0xf] }
  0xf4   :  { %1998 = vmatpush.bf16.msra.mxu3 %v2704_v34  ;;  %v3008_v34 = vor.u32 %v3491_v17, %v3005_v19  ;;  %v3136_v35 = vor.u32 %v3523_v24, %v3133_v25  ;;  %v3447_v0 = vld [vmem:[#allocation6 + $0x42c] sm:$0xf]  ;;  %v2829_v1 = vld [vmem:[#allocation6 + $0x438] sm:$0xf0]  ;;  %v3232_v5 = vor.u32 %v3547_v58, %v3229_v59 }
  0xf5   :  { %1960 = vmatpush.bf16.msra.mxu0 %v2304_v43  ;;  %v1754_v33 = vpop.f32.mrf.mxu0  ;;  %v3519_v43 = vld [vmem:[#allocation6 + $0x66c] sm:$0xf]  ;;  %v2957_v6 = vld [vmem:[#allocation6 + $0x538] sm:$0xf0] }
  0xf6   :  { %1973 = vmatpush.bf16.msra.mxu1 %v2432_v47  ;;  %v1767_v40 = vpop.f32.mrf.mxu1  ;;  %v3245_v47 = vld [vmem:[#allocation6 + $0x778] sm:$0xf0]  ;;  %v3120_v50 = vor.u32 %v3519_v43, %v3117_v44  ;;  %v3511_v7 = vld [vmem:[#allocation6 + $0x62c] sm:$0xf] }
  0xf7   :  { %1986 = vmatpush.bf16.msra.mxu2 %v2560_v48  ;;  %v1768_v45 = vadd.f32 %v1767_v40, %v1754_v33  ;;  %v2864_v48 = vor.u32 %v3455_v36, %v2861_v37  ;;  %v3248_v21 = vor.u32 %v3551_v46, %v3245_v47  ;;  %v3085_v8 = vld [vmem:[#allocation6 + $0x638] sm:$0xf0]  ;;  %v3543_v29 = vld [vmem:[#allocation6 + $0x72c] sm:$0xf] }
  0xf8   :  { %1999 = vmatpush.bf16.msra.mxu3 %v2688_v51  ;;  %1961 = vmatmul.bf16.vlgmr.msra.gmra.mxu0 %v3589_v9  ;;  %v3451_v51 = vld [vmem:[#allocation6 + $0x44c] sm:$0xf]  ;;  %v3213_v9 = vld [vmem:[#allocation6 + $0x738] sm:$0xf0] }
  0xf9   :  { %2005 = vmatpush.bf16.msrb.mxu0 %v2928_v20  ;;  %1974 = vmatmul.bf16.vlgmr.msra.gmra.mxu1 %v3591_v12  ;;  %v2845_v20 = vld [vmem:[#allocation6 + $0x458] sm:$0xf0]  ;;  %v3088_v12 = vor.u32 %v3511_v7, %v3085_v8  ;;  %v3475_v14 = vld [vmem:[#allocation6 + $0x50c] sm:$0xf]  ;;  %v3216_v17 = vor.u32 %v3543_v29, %v3213_v9  ;;  %v2104_v9 = vld [vmem:[#allocation9 + $0x60] sm:$0xff] }
  0xfa   :  { %2018 = vmatpush.bf16.msrb.mxu1 %v3056_v52  ;;  %1987 = vmatmul.bf16.vlgmr.msra.gmra.mxu2 %v3588_v3  ;;  %v3483_v52 = vld [vmem:[#allocation6 + $0x54c] sm:$0xf]  ;;  %v2848_v53 = vor.u32 %v3451_v51, %v2845_v20  ;;  %v3069_v24 = vld [vmem:[#allocation6 + $0x618] sm:$0xf0] }
  0xfb   :  { %2031 = vmatpush.bf16.msrb.mxu2 %v3184_v54  ;;  %2000 = vmatmul.bf16.vlgmr.msra.gmra.mxu3 %v3590_v10  ;;  %v2832_v10 = vor.u32 %v3447_v0, %v2829_v1  ;;  %v3507_v19 = vld [vmem:[#allocation6 + $0x60c] sm:$0xf]  ;;  %v3197_v28 = vld [vmem:[#allocation6 + $0x718] sm:$0xf0]  ;;  %v2106_v0 = vld [vmem:[#allocation9 + $0x70] sm:$0xff] }
  0xfc   :  { %2044 = vmatpush.bf16.msrb.mxu3 %v3312_v26  ;;  %v3101_v26 = vld [vmem:[#allocation6 + $0x658] sm:$0xf0]  ;;  %v3539_v27 = vld [vmem:[#allocation6 + $0x70c] sm:$0xf]  ;;  %v2122_v1 = vld [vmem:[#allocation9 + $0xf0] sm:$0xff] }
  0xfd   :  { %2006 = vmatpush.bf16.msrb.mxu0 %v2912_v60  ;;  %v1780_v54 = vpop.f32.mrf.mxu2  ;;  %v3104_v63 = vor.u32 %v3515_v55, %v3101_v26  ;;  %v2121_v7 = vld [vmem:[#allocation9 + $0xe8] sm:$0xff] }
  0xfe   :  { %2019 = vmatpush.bf16.msrb.mxu1 %v3040_v61  ;;  %v1781_v56 = vadd.f32 %v1780_v54, %v1768_v45  ;;  %v1793_v57 = vpop.f32.mrf.mxu3  ;;  %v1756_v61 = vpop.f32.mrf.mxu0  ;;  %v2137_v8 = vld [vmem:[#allocation9 + $0x168] sm:$0xff] }
  0xff   :  { %2032 = vmatpush.bf16.msrb.mxu2 %v3168_v62  ;;  %v2976_v62 = vor.u32 %v3483_v52, %v2973_v22  ;;  %v1769_v3 = vpop.f32.mrf.mxu1  ;;  %v2139_v61 = vld [vmem:[#allocation9 + $0x178] sm:$0xff]  ;;  %v2153_v29 = vld [vmem:[#allocation9 + $0x1e8] sm:$0xff] }
 0x100   :  { %2045 = vmatpush.bf16.msrb.mxu3 %v3296_v2  ;;  %v1794_v60 = vadd.f32 %v1793_v57, %v1781_v56  ;;  %v3479_v2 = vld [vmem:[#allocation6 + $0x52c] sm:$0xf]  ;;  %v2138_v3 = vld [vmem:[#allocation9 + $0x170] sm:$0xff] }
 0x101   :  { %2007 = vmatpush.bf16.msrb.mxu0 %v2896_v11  ;;  %v2960_v11 = vor.u32 %v3479_v2, %v2957_v6  ;;  %v2105_v6 = vld [vmem:[#allocation9 + $0x68] sm:$0xff] }
 0x102   :  { %2020 = vmatpush.bf16.msrb.mxu1 %v3024_v31  ;;  %v3443_v31 = vld [vmem:[#allocation6 + $0x40c] sm:$0xf] }
 0x103   :  { %2033 = vmatpush.bf16.msrb.mxu2 %v3152_v32  ;;  %v2813_v32 = vld [vmem:[#allocation6 + $0x418] sm:$0xf0] }
 0x104   :  { %2046 = vmatpush.bf16.msrb.mxu3 %v3280_v18  ;;  %v2941_v18 = vld [vmem:[#allocation6 + $0x518] sm:$0xf0] }
 0x105   :  { %2008 = vmatpush.bf16.msrb.mxu0 %v2880_v30  ;;  %v1782_v38 = vpop.f32.mrf.mxu2  ;;  %v2816_v30 = vor.u32 %v3443_v31, %v2813_v32  ;;  %v2944_v33 = vor.u32 %v3475_v14, %v2941_v18  ;;  %v2152_v31 = vld [vmem:[#allocation9 + $0x1e0] sm:$0xff]  ;;  %v2103_v32 = vld [vmem:[#allocation9 + $0x58] sm:$0xff] }
 0x106   :  { %2021 = vmatpush.bf16.msrb.mxu1 %v3008_v34  ;;  %v1795_v25 = vpop.f32.mrf.mxu3  ;;  %v3072_v34 = vor.u32 %v3507_v19, %v3069_v24  ;;  %v2119_v14 = vld [vmem:[#allocation9 + $0xd8] sm:$0xff]  ;;  %v2102_v19 = vld [vmem:[#allocation9 + $0x50] sm:$0xff] }
 0x107   :  { %2034 = vmatpush.bf16.msrb.mxu2 %v3136_v35  ;;  %v3200_v35 = vor.u32 %v3539_v27, %v3197_v28  ;;  %v2151_v18 = vld [vmem:[#allocation9 + $0x1d8] sm:$0xff]  ;;  %v2118_v24 = vld [vmem:[#allocation9 + $0xd0] sm:$0xff] }
 0x108   :  { %2047 = vmatpush.bf16.msrb.mxu3 %v3264_v41  ;;  %v2134_v25 = vld [vmem:[#allocation9 + $0x150] sm:$0xff] }
 0x109   :  { %2009 = vmatpush.bf16.msrb.mxu0 %v2864_v48  ;;  %v2150_v27 = vld [vmem:[#allocation9 + $0x1d0] sm:$0xff] }
 0x10a   :  { %2022 = vmatpush.bf16.msrb.mxu1 %v2992_v49 }
 0x10b   :  { %2035 = vmatpush.bf16.msrb.mxu2 %v3120_v50 }
 0x10c   :  { %2048 = vmatpush.bf16.msrb.mxu3 %v3248_v21 }
 0x10d   :  { %2010 = vmatpush.bf16.msrb.mxu0 %v2848_v53  ;;  %v2107_v53 = vld [vmem:[#allocation9 + $0x78] sm:$0xff] }
 0x10e   :  { %2023 = vmatpush.bf16.msrb.mxu1 %v2976_v62 }
 0x10f   :  { %2036 = vmatpush.bf16.msrb.mxu2 %v3104_v63  ;;  %v2155_v63 = vld [vmem:[#allocation9 + $0x1f8] sm:$0xff] }
 0x110   :  { %2049 = vmatpush.bf16.msrb.mxu3 %v3232_v5  ;;  %v2154_v5 = vld [vmem:[#allocation9 + $0x1f0] sm:$0xff] }
 0x111   :  { %2011 = vmatpush.bf16.msrb.mxu0 %v2832_v10  ;;  %v2120_v10 = vld [vmem:[#allocation9 + $0xe0] sm:$0xff] }
 0x112   :  { %2024 = vmatpush.bf16.msrb.mxu1 %v2960_v11  ;;  %v2136_v11 = vld [vmem:[#allocation9 + $0x160] sm:$0xff] }
 0x113   :  { %2037 = vmatpush.bf16.msrb.mxu2 %v3088_v12 }
 0x114   :  { %2050 = vmatpush.bf16.msrb.mxu3 %v3216_v17  ;;  %v2135_v17 = vld [vmem:[#allocation9 + $0x158] sm:$0xff] }
 0x115   :  { %2012 = vmatpush.bf16.msrb.mxu0 %v2816_v30  ;;  %v1806_v36 = vpop.f32.mrf.mxu0  ;;  %v2101_v30 = vld [vmem:[#allocation9 + $0x48] sm:$0xff] }
 0x116   :  { %2025 = vmatpush.bf16.msrb.mxu1 %v2944_v33  ;;  %v1807_v37 = vadd.f32 %v1806_v36, %v1794_v60  ;;  %v1819_v39 = vpop.f32.mrf.mxu1  ;;  %v2123_v60 = vld [vmem:[#allocation9 + $0xf8] sm:$0xff]  ;;  %v2117_v33 = vld [vmem:[#allocation9 + $0xc8] sm:$0xff] }
 0x117   :  { %2038 = vmatpush.bf16.msrb.mxu2 %v3072_v34  ;;  %v2133_v34 = vld [vmem:[#allocation9 + $0x148] sm:$0xff] }
 0x118   :  { %2051 = vmatpush.bf16.msrb.mxu3 %v3200_v35  ;;  %2013 = vmatmul.bf16.vlgmr.msrb.gmra.mxu0 %v3812_v15  ;;  %v1820_v40 = vadd.f32 %v1819_v39, %v1807_v37  ;;  %v2149_v36 = vld [vmem:[#allocation9 + $0x1c8] sm:$0xff]  ;;  %v2100_v37 = vld [vmem:[#allocation9 + $0x40] sm:$0xff] }
 0x119   :  { %2026 = vmatmul.bf16.vlgmr.msrb.gmra.mxu1 %v3818_v23  ;;  %2170 = vmatpush.msra.mxu0 %v2107_v53  ;;  %v2116_v39 = vld [vmem:[#allocation9 + $0xc0] sm:$0xff]  ;;  %v2095_v53 = vld [vmem:[#allocation9 + $0x18] sm:$0xff] }
 0x11a   :  { %2039 = vmatmul.bf16.vlgmr.msrb.gmra.mxu2 %v3809_v13  ;;  %2190 = vmatpush.msra.mxu1 %v2123_v60  ;;  %v2111_v60 = vld [vmem:[#allocation9 + $0x98] sm:$0xff] }
 0x11b   :  { %2052 = vmatmul.bf16.vlgmr.msrb.gmra.mxu3 %v3815_v16  ;;  %2210 = vmatpush.msra.mxu2 %v2139_v61  ;;  %v2127_v61 = vld [vmem:[#allocation9 + $0x118] sm:$0xff] }
 0x11c   :  { %2230 = vmatpush.msra.mxu3 %v2155_v63  ;;  %2171 = vmatpush.msra.mxu0 %v2106_v0  ;;  %v2094_v63 = vld [vmem:[#allocation9 + $0x10] sm:$0xff] }
 0x11d   :  { %v1832_v41 = vpop.f32.mrf.mxu2  ;;  %v1808_v45 = vpop.f32.mrf.mxu0  ;;  %2191 = vmatpush.msra.mxu1 %v2122_v1  ;;  %2211 = vmatpush.msra.mxu2 %v2138_v3  ;;  %v2110_v0 = vld [vmem:[#allocation9 + $0x90] sm:$0xff]  ;;  %v2093_v3 = vld [vmem:[#allocation9 + $0x8] sm:$0xff] }
 0x11e   :  { %v1833_v42 = vadd.f32 %v1832_v41, %v1820_v40  ;;  %v1845_v43 = vpop.f32.mrf.mxu3  ;;  %v1821_v46 = vpop.f32.mrf.mxu1  ;;  %2231 = vmatpush.msra.mxu3 %v2154_v5  ;;  %2172 = vmatpush.msra.mxu0 %v2105_v6  ;;  %v2132_v40 = vld [vmem:[#allocation9 + $0x140] sm:$0xff]  ;;  %v2115_v45 = vld [vmem:[#allocation9 + $0xb8] sm:$0xff]  ;;  %v2126_v1 = vld [vmem:[#allocation9 + $0x110] sm:$0xff] }
 0x11f   :  { %2192 = vmatpush.msra.mxu1 %v2121_v7  ;;  %2212 = vmatpush.msra.mxu2 %v2137_v8  ;;  %v2131_v46 = vld [vmem:[#allocation9 + $0x138] sm:$0xff]  ;;  %v2109_v5 = vld [vmem:[#allocation9 + $0x88] sm:$0xff] }
 0x120   :  { %v1846_v44 = vadd.f32 %v1845_v43, %v1833_v42  ;;  %2232 = vmatpush.msra.mxu3 %v2153_v29  ;;  %2173 = vmatpush.msra.mxu0 %v2104_v9  ;;  %v2148_v42 = vld [vmem:[#allocation9 + $0x1c0] sm:$0xff]  ;;  %v2125_v7 = vld [vmem:[#allocation9 + $0x108] sm:$0xff] }
 0x121   :  { %2193 = vmatpush.msra.mxu1 %v2120_v10  ;;  %2213 = vmatpush.msra.mxu2 %v2136_v11  ;;  %v2141_v8 = vld [vmem:[#allocation9 + $0x188] sm:$0xff]  ;;  %v2092_v29 = vld [vmem:[#allocation9] sm:$0xff] }
 0x122   :  { %v2061_v47 = vrot.slane %v1846_v44, 6  ;;  %2233 = vmatpush.msra.mxu3 %v2152_v31  ;;  %2174 = vmatpush.msra.mxu0 %v2103_v32  ;;  %v2099_v44 = vld [vmem:[#allocation9 + $0x38] sm:$0xff]  ;;  %v2108_v9 = vld [vmem:[#allocation9 + $0x80] sm:$0xff] }
 0x123   :  { %2194 = vmatpush.msra.mxu1 %v2119_v14  ;;  %2214 = vmatpush.msra.mxu2 %v2135_v17  ;;  %v2124_v10 = vld [vmem:[#allocation9 + $0x100] sm:$0xff] }
 0x124   :  { %v3830_v15 = vsel %vm2064_vm0, %v3822_v4, %v2061_v47  ;;  %2234 = vmatpush.msra.mxu3 %v2151_v18  ;;  %2175 = vmatpush.msra.mxu0 %v2102_v19  ;;  %v2147_v47 = vld [vmem:[#allocation9 + $0x1b8] sm:$0xff]  ;;  %v2140_v11 = vld [vmem:[#allocation9 + $0x180] sm:$0xff] }
 0x125   :  { %v1834_v23 = vpop.f32.mrf.mxu2  ;;  %2195 = vmatpush.msra.mxu1 %v2118_v24  ;;  %2215 = vmatpush.msra.mxu2 %v2134_v25 }
 0x126   :  { %v1847_v13 = vpop.f32.mrf.mxu3  ;;  %2235 = vmatpush.msra.mxu3 %v2150_v27  ;;  %2176 = vmatpush.msra.mxu0 %v2101_v30  ;;  %v2098_v23 = vld [vmem:[#allocation9 + $0x30] sm:$0xff] }
 0x127   :  { %2196 = vmatpush.msra.mxu1 %v2117_v33  ;;  %2216 = vmatpush.msra.mxu2 %v2133_v34  ;;  %v2114_v13 = vld [vmem:[#allocation9 + $0xb0] sm:$0xff] }
 0x128   :  { %2236 = vmatpush.msra.mxu3 %v2149_v36  ;;  %2177 = vmatpush.msra.mxu0 %v2100_v37 }
 0x129   :  { %2197 = vmatpush.msra.mxu1 %v2116_v39  ;;  %2217 = vmatpush.msra.mxu2 %v2132_v40 }
 0x12a   :  { %2237 = vmatpush.msra.mxu3 %v2148_v42  ;;  %2178 = vmatpush.msra.mxu0 %v2099_v44 }
 0x12b   :  { %2198 = vmatpush.msra.mxu1 %v2115_v45  ;;  %2218 = vmatpush.msra.mxu2 %v2131_v46 }
 0x12c   :  { %2238 = vmatpush.msra.mxu3 %v2147_v47  ;;  %2179 = vmatpush.msra.mxu0 %v2098_v23 }
 0x12d   :  { %2199 = vmatpush.msra.mxu1 %v2114_v13 }
 0x135   :  { %v1858_v48 = vpop.f32.mrf.mxu0 }
 0x136   :  { %v1871_v16 = vpop.f32.mrf.mxu1 }
 0x137   :  { %v1872_v49 = vadd.f32 %v1871_v16, %v1858_v48  ;;  %v2130_v48 = vld [vmem:[#allocation9 + $0x130] sm:$0xff] }
 0x138   :  { %v2146_v16 = vld [vmem:[#allocation9 + $0x1b0] sm:$0xff]  ;;  %2219 = vmatpush.msra.mxu2 %v2130_v48 }
 0x139   :  { %2239 = vmatpush.msra.mxu3 %v2146_v16 }
 0x13d   :  { %v1884_v50 = vpop.f32.mrf.mxu2  ;;  %v1860_v54 = vpop.f32.mrf.mxu0 }
 0x13e   :  { %v1885_v51 = vadd.f32 %v1884_v50, %v1872_v49  ;;  %v1897_v20 = vpop.f32.mrf.mxu3  ;;  %v1873_v21 = vpop.f32.mrf.mxu1  ;;  %v2097_v50 = vld [vmem:[#allocation9 + $0x28] sm:$0xff] }
 0x13f   :  { %2180 = vmatpush.msra.mxu0 %v2097_v50  ;;  %v2145_v21 = vld [vmem:[#allocation9 + $0x1a8] sm:$0xff] }
 0x140   :  { %v3832_v52 = vadd.f32 %v1897_v20, %v1885_v51  ;;  %v2113_v51 = vld [vmem:[#allocation9 + $0xa8] sm:$0xff]  ;;  %2240 = vmatpush.msra.mxu3 %v2145_v21 }
 0x141   :  { %v2129_v20 = vld [vmem:[#allocation9 + $0x128] sm:$0xff]  ;;  %2200 = vmatpush.msra.mxu1 %v2113_v51 }
 0x142   :  { %2220 = vmatpush.msra.mxu2 %v2129_v20  ;;  %v3579_v20 = vld [vmem:[%s3871_s4] ss:$0 sm:$0xff]  ;;  %s3728_s4 = smov [#allocation11]  }
 0x143   :  { %s2275_s15 = sshll.u32 %s3728_s4, 4  ;;  %s2276_s15 = int_to_ptr.vmem [resolvable:$true] %s2275_s15 }
 0x145   :  { %v1886_v22 = vpop.f32.mrf.mxu2 }
 0x146   :  { %v1899_v55 = vpop.f32.mrf.mxu3  ;;  %v2096_v22 = vld [vmem:[#allocation9 + $0x20] sm:$0xff] }
 0x147   :  { %v2112_v55 = vld [vmem:[#allocation9 + $0xa0] sm:$0xff]  ;;  %2181 = vmatpush.msra.mxu0 %v2096_v22 }
 0x148   :  { %2201 = vmatpush.msra.mxu1 %v2112_v55 }
 0x149   :  { %2182 = vmatpush.msra.mxu0 %v2095_v53 }
 0x14a   :  { %2202 = vmatpush.msra.mxu1 %v2111_v60 }
 0x14b   :  { %2183 = vmatpush.msra.mxu0 %v2094_v63 }
 0x14c   :  { %2203 = vmatpush.msra.mxu1 %v2110_v0 }
 0x14d   :  { %2184 = vmatpush.msra.mxu0 %v2093_v3 }
 0x14e   :  { %2204 = vmatpush.msra.mxu1 %v2109_v5 }
 0x14f   :  { %2185 = vmatpush.msra.mxu0 %v2092_v29 }
 0x150   :  { %2205 = vmatpush.msra.mxu1 %v2108_v9 }
 0x155   :  { %v3834_v26 = vpop.f32.mrf.mxu0 }
 0x156   :  { %v3836_v56 = vpop.f32.mrf.mxu1  ;;  %v1911_v31 = vadd.f32 %v3834_v26, %v3832_v52 }
 0x158   :  { %v1924_v14 = vadd.f32 %v3836_v56, %v1911_v31 }
 0x15d   :  { %v3838_v4 = vpop.f32.mrf.mxu2  ;;  %v1912_v58 = vpop.f32.mrf.mxu0 }
 0x15e   :  { %v3840_v57 = vpop.f32.mrf.mxu3  ;;  %v1925_v59 = vpop.f32.mrf.mxu1  ;;  %v2128_v58 = vld [vmem:[#allocation9 + $0x120] sm:$0xff]  ;;  %v1937_v30 = vadd.f32 %v3838_v4, %v1924_v14 }
 0x15f   :  { %v2144_v59 = vld [vmem:[#allocation9 + $0x1a0] sm:$0xff]  ;;  %2221 = vmatpush.msra.mxu2 %v2128_v58 }
 0x160   :  { %2241 = vmatpush.msra.mxu3 %v2144_v59  ;;  %v1950_v37 = vadd.f32 %v3840_v57, %v1937_v30 }
 0x161   :  { %2222 = vmatpush.msra.mxu2 %v2127_v61 }
 0x162   :  { %v2062_v44 = vrot.slane %v1950_v37, 4 }
 0x163   :  { %2223 = vmatpush.msra.mxu2 %v2126_v1 }
 0x165   :  { %v1938_v62 = vpop.f32.mrf.mxu2  ;;  %2224 = vmatpush.msra.mxu2 %v2125_v7 }
 0x166   :  { %v1951_v2 = vpop.f32.mrf.mxu3  ;;  %v2143_v62 = vld [vmem:[#allocation9 + $0x198] sm:$0xff] }
 0x167   :  { %v2142_v2 = vld [vmem:[#allocation9 + $0x190] sm:$0xff]  ;;  %2242 = vmatpush.msra.mxu3 %v2143_v62  ;;  %2225 = vmatpush.msra.mxu2 %v2124_v10 }
 0x169   :  { %2243 = vmatpush.msra.mxu3 %v2142_v2 }
 0x16b   :  { %2244 = vmatpush.msra.mxu3 %v2141_v8 }
 0x16d   :  { %2245 = vmatpush.msra.mxu3 %v2140_v11 }
 0x175   :  { %v3842_v12 = vpop.f32.mrf.mxu0 }
 0x176   :  { %v3844_v38 = vpop.f32.mrf.mxu1 }
 0x177   :  { %v1976_v6 = vadd.f32 %v3844_v38, %v3842_v12  ;;  %v2077_v12 = vld [vmem:[#allocation8] sm:$0xf] }
 0x178   :  { %v2080_v19 = vperm.slane %v2077_v12, 1  ;;  %v2081_v25 = vperm.slane %v2077_v12, 2  ;;  %v2082_v27 = vperm.slane %v2077_v12, 3  ;;  %v2079_v52 = vperm.slane %v2077_v12, 0 }
 0x17a   :  { %v2083_v26 = vrot.slane %v2080_v19, 6  ;;  %v2084_v33 = vrot.slane %v2081_v25, 4  ;;  %v2085_v34 = vrot.slane %v2082_v27, 2 }
 0x17d   :  { %v3846_v28 = vpop.f32.mrf.mxu2  ;;  %v1964_v41 = vpop.f32.mrf.mxu0 }
 0x17e   :  { %v3848_v35 = vpop.f32.mrf.mxu3  ;;  %v1977_v43 = vpop.f32.mrf.mxu1  ;;  %v1989_v32 = vadd.f32 %v3846_v28, %v1976_v6  ;;  %v2086_v41 = vsel %vm2064_vm0, %v2079_v52, %v2083_v26 }
 0x17f   :  { %v2087_v43 = vsel %vm2066_vm1, %v2084_v33, %v2085_v34 }
 0x180   :  { %v2002_v38 = vadd.f32 %v3848_v35, %v1989_v32  ;;  %v2088_v45 = vsel %vm2068_vm2, %v2086_v41, %v2087_v43 }
 0x185   :  { %v1990_v49 = vpop.f32.mrf.mxu2 }
 0x186   :  { %v2003_v54 = vpop.f32.mrf.mxu3 }
 0x195   :  { %v2014_v17 = vpop.f32.mrf.mxu0 }
 0x196   :  { %v2027_v18 = vpop.f32.mrf.mxu1  ;;  %v2015_v24 = vadd.f32 %v2014_v17, %v2002_v38 }
 0x198   :  { %v2028_v28 = vadd.f32 %v2027_v18, %v2015_v24 }
 0x19d   :  { %v2040_v36 = vpop.f32.mrf.mxu2  ;;  %v2016_v35 = vpop.f32.mrf.mxu0 }
 0x19e   :  { %v2041_v56 = vadd.f32 %v2040_v36, %v2028_v28  ;;  %v2053_v39 = vpop.f32.mrf.mxu3  ;;  %v2029_v40 = vpop.f32.mrf.mxu1 }
 0x1a0   :  { %v2054_v42 = vadd.f32 %v2053_v39, %v2041_v56 }
 0x1a2   :  { %v2063_v4 = vrot.slane %v2054_v42, 2 }
 0x1a4   :  { %v2067_v46 = vsel %vm2066_vm1, %v2062_v44, %v2063_v4 }
 0x1a5   :  { %v2069_v47 = vsel %vm2068_vm2, %v3830_v15, %v2067_v46  ;;  %v2042_v23 = vpop.f32.mrf.mxu2 }
 0x1a6   :  { %v2090_v13 = vadd.f32 %v2088_v45, %v2069_v47  ;;  %v2055_v48 = vpop.f32.mrf.mxu3 }
 0x1a8   :  { %v2091_v16 = vmax.f32 %v2090_v13, 0.0 }
 0x1aa   :  { %2161 = vst [vmem:[#allocation1] ss:$4 sm:$0xff] %v2091_v16 }
 0x1b1   :  { %v2162_v57 = vld.sshfl [vmem:[#allocation1] sm:$0xff pattern:$0x73625140]  ;;  %v2163_v49 = vld.sshfl [vmem:[#allocation1 + $0x8] sm:$0xff pattern:$0x73625140] }
 0x1b2   :  { %2186 = vmatmul.f32.vlgmr.msra.gmra.mxu0 %v2162_v57  ;;  %2206 = vmatmul.f32.vlgmr.msra.gmra.mxu1 %v2163_v49  ;;  %v2164_v50 = vld.sshfl [vmem:[#allocation1 + $0x10] sm:$0xff pattern:$0x73625140]  ;;  %v2165_v51 = vld.sshfl [vmem:[#allocation1 + $0x18] sm:$0xff pattern:$0x73625140] }
 0x1b3   :  { %2226 = vmatmul.f32.vlgmr.msra.gmra.mxu2 %v2164_v50  ;;  %2246 = vmatmul.f32.vlgmr.msra.gmra.mxu3 %v2165_v51 }
 0x22f   :  { %v2187_v54 = vpop.f32.mrf.mxu0  ;;  %v2207_v15 = vpop.f32.mrf.mxu1 }
 0x230   :  { %v2188_v21 = vadd.f32 %v3579_v20, %v2187_v54 }
 0x232   :  { %v2208_v22 = vadd.f32 %v2207_v15, %v2188_v21 }
 0x236   :  { %v2227_v55 = vpop.f32.mrf.mxu2  ;;  %v2247_v59 = vpop.f32.mrf.mxu3 }
 0x237   :  { %v2228_v58 = vadd.f32 %v2227_v55, %v2208_v22 }
 0x239   :  { %v2248_v53 = vadd.f32 %v2247_v59, %v2228_v58 }
 0x23b   :  { %v3313_v60 = vmul.f32 -1.442695, %v2248_v53 }
 0x23d   :  { %3580 = vpow2.f32 %v3313_v60 }
 0x243   :  { %v3581_v61 = vpop.eup %3580 }
 0x244   :  { %v2253_v62 = vadd.f32 1.0, %v3581_v61 }
 0x246   :  { %3582 = vrcp.f32 %v2253_v62  ;;  %v2265_v2 = vand.u32 2147483648, %v2253_v62  ;;  %v2263_v5 = vand.u32 2147483647, %v2253_v62  ;;  %vm2259_vm4 = vweird.f32 %v2253_v62 }
 0x248   :  { %v2266_v7 = vor.u32 1.1754944e-38, %v2265_v2  ;;  %vm2264_vm6 = vcmp.eq.f32.partialorder %v2263_v5, 8.507059e+37 }
 0x24c   :  { %v3583_v63 = vpop.eup %3582 }
 0x24d   :  { %v2255_v0 = vmul.f32 %v3583_v63, %v2253_v62  ;;  %vm2260_vm3 = vweird.f32 %v3583_v63 }
 0x24e   :  { %vm2261_vm5 = vmor %vm2259_vm4, %vm2260_vm3 }
 0x24f   :  { %v2256_v1 = vsub.f32 1.0, %v2255_v0 }
 0x251   :  { %v2257_v3 = vmul.f32 %v3583_v63, %v2256_v1 }
 0x253   :  { %v2258_v6 = vadd.f32 %v3583_v63, %v2257_v3 }
 0x255   :  { %v2262_v8 = vsel %vm2261_vm5, %v3583_v63, %v2258_v6 }
 0x256   :  { %v2267_v29 = vsel %vm2264_vm6, %v2266_v7, %v2262_v8 }
 0x257   :  { %2269 = vst [vmem:[#allocation11] sm:$0x3] %v2267_v29 }
 0x258   :  { %2280 = dma.vmem_to_hbm [thread:$0]  %s2276_s15, 32, %s2278_s18, [#allocation5]  }
 0x259   :  { %3718 = dma.done.wait [#allocation5], 32  }
 0x25a   :  { %3719 = vsyncadd [#allocation5], 4294967264 }
 0x25b   :  { %2285 = vsyncpa [#allocation4], 1 }
 0x25c   :  { %2286 = vsyncpa [#allocation7], 1 }
 0x25d   :  { %2287 = vsyncpa [#allocation10], 1 }
 0x25e   :  { %2288 = vsyncpa [#allocation5], 1 }

</bundles_post_ra>
